<compile_context>
chip_gen: v7x
topology: tpu7x:2x2x1
jax: 0.10.0
libtpu: 0.0.40
codegen_flags: <defaults>
</compile_context>

<pallas_src>
import functools

import jax
import jax.numpy as jnp
from jax.experimental import pallas as pl
from jax.experimental.pallas import tpu as pltpu


# ---------------------------------------------------------------------------
# Fused kernel: backbone + heads + FocalLoss / smooth-L1.
# Grid = (B, A // TA); anchor axis on lanes everywhere.
# ---------------------------------------------------------------------------
def _fused_kernel(x_ref, w_bb_ref, b_bb_ref, w_heads_ref, b_heads_ref,
                  aux_ref, ann_m5_ref, ann_5m_ref,
                  loss_cls_ref, loss_reg_ref,
                  acc_cls_ref, acc_reg_ref, acc_np_ref, *, num_classes):
    a_idx = pl.program_id(1)
    na = pl.num_programs(1)

    # Per-image raw accumulators, reset on the first A-tile of each image.
    @pl.when(a_idx == 0)
    def _():
        acc_cls_ref[...] = jnp.zeros_like(acc_cls_ref)
        acc_reg_ref[...] = jnp.zeros_like(acc_reg_ref)
        acc_np_ref[...] = jnp.zeros_like(acc_np_ref)

    alpha = 0.25
    K = num_classes

    # --- backbone (1x1 conv + ReLU) and fused cls+reg heads (bf16 MXU) ------
    xb = x_ref[0]                                                  # [Cin, TA] bf16
    feat = jnp.dot(w_bb_ref[...], xb, preferred_element_type=jnp.float32)
    feat = jnp.maximum(feat + b_bb_ref[...], 0.0)                  # [D, TA]  f32
    heads = jnp.dot(w_heads_ref[...], feat.astype(jnp.bfloat16),
                    preferred_element_type=jnp.float32) + b_heads_ref[...]
    cls_logits = heads[0:K, :]                                     # [K, TA]
    regT = heads[K:K + 4, :]                                       # [4, TA]
    # Clamped-probability focal loss (matches the reference FocalLoss clamp).
    cls = jnp.clip(jax.nn.sigmoid(cls_logits), 1e-4, 1.0 - 1e-4)   # [K, TA]

    # --- precomputed anchor invariants --------------------------------------
    aux = aux_ref[...]                 # [9, TA]: y1,x1,y2,x2,area,cx,cy,1/w,1/h
    ay1, ax1 = aux[0:1, :], aux[1:2, :]
    ay2, ax2 = aux[2:3, :], aux[3:4, :]
    area_a = aux[4:5, :]
    acx, acy = aux[5:6, :], aux[6:7, :]
    inv_aw, inv_ah = aux[7:8, :], aux[8:9, :]

    ann = ann_m5_ref[0]                # [M, 5]: x1, y1, x2, y2, cls (-1 = pad)
    M = ann.shape[0]
    TA = aux.shape[1]
    bx1, by1 = ann[:, 0:1], ann[:, 1:2]                            # [M, 1]
    bx2, by2 = ann[:, 2:3], ann[:, 3:4]
    bcls = ann[:, 4:5]
    valid = bcls != -1.0

    # --- IoU between anchors and gt boxes, [M, TA] ---------------------------
    area_b = (bx2 - bx1) * (by2 - by1)                             # [M, 1]
    iw = jnp.maximum(jnp.minimum(ax2, bx2) - jnp.maximum(ax1, bx1), 0.0)
    ih = jnp.maximum(jnp.minimum(ay2, by2) - jnp.maximum(ay1, by1), 0.0)
    inter = iw * ih                                                # [M, TA]
    ua = jnp.maximum(area_a + area_b - inter, 1e-8)
    iou = inter * pl.reciprocal(ua, approx=True)
    iou = jnp.where(valid, iou, -1.0)          # padded annotations never match

    iou_max = jnp.max(iou, axis=0, keepdims=True)                  # [1, TA]
    row_iota = jax.lax.broadcasted_iota(jnp.int32, (M, TA), 0).astype(jnp.float32)
    first_max = jnp.min(jnp.where(iou >= iou_max, row_iota, float(M)),
                        axis=0, keepdims=True)                     # [1, TA]
    onehot = (row_iota == first_max).astype(jnp.float32)           # [M, TA]

    # One-hot gather of the assigned gt box on the MXU: [5,M]@[M,TA] -> [5,TA]
    gathered = jnp.dot(ann_5m_ref[0], onehot,
                       preferred_element_type=jnp.float32)
    gx1, gy1 = gathered[0:1, :], gathered[1:2, :]
    gx2, gy2 = gathered[2:3, :], gathered[3:4, :]
    gcls = gathered[4:5, :]

    pos = iou_max >= 0.5                                           # [1, TA]
    neg = iou_max < 0.4
    pos_f = pos.astype(jnp.float32)
    num_pos = jnp.sum(pos_f)

    # --- classification focal loss (raw sum), [K, TA] ------------------------
    cls_iota = jax.lax.broadcasted_iota(jnp.int32, (K, TA), 0).astype(jnp.float32)
    onehot_cls = (cls_iota == jnp.round(gcls)).astype(jnp.float32)
    targets = jnp.where(pos, onehot_cls,
                        jnp.where(neg, 0.0, -1.0))                 # [K, TA]
    is_one = targets == 1.0
    alpha_factor = jnp.where(is_one, alpha, 1.0 - alpha)
    focal_weight = jnp.where(is_one, 1.0 - cls, cls)
    focal_weight = alpha_factor * focal_weight * focal_weight      # gamma = 2
    bce = -(targets * jnp.log(cls) + (1.0 - targets) * jnp.log(1.0 - cls))
    cls_loss = jnp.where(targets != -1.0, focal_weight * bce, 0.0)
    sum_cls = jnp.sum(cls_loss)

    # --- box regression smooth-L1 (raw sum over positives), [1, TA] ----------
    gw_raw = gx2 - gx1
    gh_raw = gy2 - gy1
    gcx = gx1 + 0.5 * gw_raw
    gcy = gy1 + 0.5 * gh_raw
    gw = jnp.maximum(gw_raw, 1.0)
    gh = jnp.maximum(gh_raw, 1.0)
    tdx = (gcx - acx) * inv_aw
    tdy = (gcy - acy) * inv_ah
    tdw = jnp.log(gw * inv_aw)
    tdh = jnp.log(gh * inv_ah)

    def sl1(d):
        ad = jnp.abs(d)
        return jnp.where(ad <= 1.0 / 9.0, 0.5 * 9.0 * ad * ad, ad - 0.5 / 9.0)

    reg_terms = (sl1(tdy - regT[0:1, :]) + sl1(tdx - regT[1:2, :]) +
                 sl1(tdh - regT[2:3, :]) + sl1(tdw - regT[3:4, :]))
    sum_reg = jnp.sum(reg_terms * pos_f)

    # --- accumulate raw partial sums across A-tiles ---------------------------
    acc_cls_ref[...] = acc_cls_ref[...] + sum_cls
    acc_reg_ref[...] = acc_reg_ref[...] + sum_reg
    acc_np_ref[...] = acc_np_ref[...] + num_pos

    # --- finalize this image's losses on its last A-tile ----------------------
    @pl.when(a_idx == na - 1)
    def _():
        npos = acc_np_ref[...]                                     # (1, 1)
        lcls = acc_cls_ref[...] / jnp.maximum(npos, 1.0)
        lreg = acc_reg_ref[...] / jnp.maximum(npos * 4.0, 1.0)
        loss_cls_ref[...] = lcls.reshape(1, 1, 1)
        loss_reg_ref[...] = lreg.reshape(1, 1, 1)


# ---------------------------------------------------------------------------
# ModelWithLoss.forward
# ---------------------------------------------------------------------------
def model_with_loss_forward(imgs, annotations, params, anchors, *, ta=None):
    B, C, H, W = imgs.shape
    A = H * W
    if ta is None:
        # Production sizing: ~1024-2048 on v7x (64 MiB VMEM), up to 4096 on
        # v5e/v6e (128 MiB).  Must divide A and be a multiple of 128.
        ta = min(A, 2048)
    assert A % 128 == 0 and A % ta == 0 and ta % 128 == 0
    na = A // ta

    D = params["w_bb"].shape[1]
    K = params["w_cls"].shape[1]
    M = annotations.shape[1]

    # NCHW -> [B, Cin, A], bf16 (halves the dominant HBM stream, native MXU).
    x = imgs.reshape(B, C, A).astype(jnp.bfloat16)

    # Transposed / fused weights (bf16); biases stay f32 (added post-matmul).
    w_bbT = params["w_bb"].T.astype(jnp.bfloat16)                  # [D, Cin]
    b_bbT = params["b_bb"].reshape(D, 1).astype(jnp.float32)       # [D, 1]
    w_headsT = jnp.concatenate([params["w_cls"], params["w_reg"]],
                               axis=1).T.astype(jnp.bfloat16)      # [K+4, D]
    b_headsT = jnp.concatenate([params["b_cls"], params["b_reg"]],
                               axis=1).reshape(K + 4, 1).astype(jnp.float32)

    # Grid-invariant anchor quantities, precomputed once:
    # rows = (y1, x1, y2, x2, area, ctr_x, ctr_y, 1/w, 1/h)  -> [9, A]
    anc = anchors[0].astype(jnp.float32)                           # [A, 4]
    ay1, ax1, ay2, ax2 = anc[:, 0], anc[:, 1], anc[:, 2], anc[:, 3]
    aw = ax2 - ax1
    ah = ay2 - ay1
    aux = jnp.stack([ay1, ax1, ay2, ax2, aw * ah,
                     ax1 + 0.5 * aw, ay1 + 0.5 * ah,
                     1.0 / aw, 1.0 / ah], axis=0)                  # [9, A]

    ann_m5 = annotations.astype(jnp.float32)                       # [B, M, 5]
    ann_5m = jnp.transpose(ann_m5, (0, 2, 1))                      # [B, 5, M]

    kernel = functools.partial(_fused_kernel, num_classes=K)
    out_cls, out_reg = pl.pallas_call(
        kernel,
        out_shape=(jax.ShapeDtypeStruct((B, 1, 1), jnp.float32),
                   jax.ShapeDtypeStruct((B, 1, 1), jnp.float32)),
        grid_spec=pltpu.PrefetchScalarGridSpec(
            num_scalar_prefetch=0,
            grid=(B, na),                       # batch (parallel) x A-tiles
            in_specs=[
                pl.BlockSpec((1, C, ta), lambda b, a: (b, 0, a)),     # image tile
                pl.BlockSpec((D, C), lambda b, a: (0, 0)),            # w_bb^T
                pl.BlockSpec((D, 1), lambda b, a: (0, 0)),            # b_bb^T
                pl.BlockSpec((K + 4, D), lambda b, a: (0, 0)),        # fused head W
                pl.BlockSpec((K + 4, 1), lambda b, a: (0, 0)),        # fused head b
                pl.BlockSpec((9, ta), lambda b, a: (0, a)),           # anchor aux
                pl.BlockSpec((1, M, 5), lambda b, a: (b, 0, 0)),      # annotations
                pl.BlockSpec((1, 5, M), lambda b, a: (b, 0, 0)),      # annotations^T
            ],
            out_specs=[
                pl.BlockSpec((1, 1, 1), lambda b, a: (b, 0, 0)),
                pl.BlockSpec((1, 1, 1), lambda b, a: (b, 0, 0)),
            ],
            scratch_shapes=[pltpu.VMEM((1, 1), jnp.float32),   # sum cls loss
                            pltpu.VMEM((1, 1), jnp.float32),   # sum reg loss
                            pltpu.VMEM((1, 1), jnp.float32)],  # num positives
        ),
        compiler_params=pltpu.CompilerParams(
            dimension_semantics=("parallel", "arbitrary"),
            vmem_limit_bytes=64 * 1024 * 1024,
        ),
    )(x, w_bbT, b_bbT, w_headsT, b_headsT, aux, ann_m5, ann_5m)

    # torch returns keepdim batch mean: shape (1,)
    loss_cls = jnp.mean(out_cls.reshape(B), keepdims=True)
    loss_reg = jnp.mean(out_reg.reshape(B), keepdims=True)
    return loss_cls, loss_reg


def make_params(key, c_in, hidden, num_classes):
    ks = jax.random.split(key, 6)
    s = 0.1
    return {
        "w_bb": s * jax.random.normal(ks[0], (c_in, hidden), jnp.float32),
        "b_bb": jnp.zeros((1, hidden), jnp.float32),
        "w_cls": s * jax.random.normal(ks[1], (hidden, num_classes), jnp.float32),
        "b_cls": jnp.full((1, num_classes), -2.0, jnp.float32),  # prior-style bias
        "w_reg": s * jax.random.normal(ks[2], (hidden, 4), jnp.float32),
        "b_reg": jnp.zeros((1, 4), jnp.float32),
    }


def make_anchors(h, w, size=4.0):
    # one anchor per pixel, (y1, x1, y2, x2), centered at pixel centers
    yy = jnp.arange(h, dtype=jnp.float32) + 0.5
    xx = jnp.arange(w, dtype=jnp.float32) + 0.5
    cy, cx = jnp.meshgrid(yy, xx, indexing="ij")
    half = size / 2.0
    anc = jnp.stack([cy - half, cx - half, cy + half, cx + half], axis=-1)
    return anc.reshape(1, h * w, 4)                                # [1, A, 4]


if __name__ == "__main__":
    B, C, H, W = 2, 4, 16, 16
    NUM_CLASSES = 8
    HIDDEN = 32
    M = 8  # annotations per image

    key = jax.random.PRNGKey(0)
    k_img, k_par, k_box, k_wh, k_cls = jax.random.split(key, 5)

    imgs = jax.random.normal(k_img, (B, C, H, W), jnp.float32)
    params = make_params(k_par, C, HIDDEN, NUM_CLASSES)
    anchors = make_anchors(H, W)                                   # [1, A, 4]

    # annotations: [B, M, 5] = (x1, y1, x2, y2, class); class == -1 -> padding
    xy1 = jax.random.uniform(k_box, (B, M, 2), jnp.float32, 0.0, 10.0)
    wh = jax.random.uniform(k_wh, (B, M, 2), jnp.float32, 3.0, 6.0)
    cls_ids = jax.random.randint(k_cls, (B, M, 1), 0, NUM_CLASSES).astype(jnp.float32)
    annotations = jnp.concatenate([xy1, xy1 + wh, cls_ids], axis=-1)
    annotations = annotations.at[0, M - 1, 4].set(-1.0)

    # ta=128 -> two A-tiles per image, exercising the partial-sum accumulation.
    fwd = jax.jit(functools.partial(model_with_loss_forward, ta=128))
    loss_cls, loss_box_reg = fwd(imgs, annotations, params, anchors)
    jax.block_until_ready((loss_cls, loss_box_reg))

    assert loss_cls.shape == (1,) and loss_box_reg.shape == (1,)
    assert bool(jnp.isfinite(loss_cls).all()) and bool(jnp.isfinite(loss_box_reg).all())
    print("KERNEL_OK")
</pallas_src>

<mosaic_0001>
module attributes {stable_mosaic.version = 11 : i64} {
  func.func @_fused_kernel(%arg0: i32, %arg1: i32, %arg2: memref<1x4x128xbf16, #tpu.memory_space<vmem>>, %arg3: memref<32x4xbf16, #tpu.memory_space<vmem>>, %arg4: memref<32x1xf32, #tpu.memory_space<vmem>>, %arg5: memref<12x32xbf16, #tpu.memory_space<vmem>>, %arg6: memref<12x1xf32, #tpu.memory_space<vmem>>, %arg7: memref<9x128xf32, #tpu.memory_space<vmem>>, %arg8: memref<1x8x5xf32, #tpu.memory_space<vmem>>, %arg9: memref<1x5x8xf32, #tpu.memory_space<vmem>>, %arg10: memref<1x1x1xf32, #tpu.memory_space<vmem>>, %arg11: memref<1x1x1xf32, #tpu.memory_space<vmem>>, %arg12: memref<1x1xf32, #tpu.memory_space<vmem>>, %arg13: memref<1x1xf32, #tpu.memory_space<vmem>>, %arg14: memref<1x1xf32, #tpu.memory_space<vmem>>) attributes {dimension_semantics = [#tpu.dimension_semantics<parallel>, #tpu.dimension_semantics<arbitrary>], iteration_bounds = array<i64: 2, 2>, scalar_prefetch = 0 : i64, scratch_operands = 3 : i64, tpu.core_type = #tpu.core_type<tc>, window_params = [{transform_indices = @transform_0, window_bounds = array<i64: 1, 4, 128>}, {pipeline_mode = #tpu.pipeline_mode<synchronous>, transform_indices = @transform_1, window_bounds = array<i64: 32, 4>}, {pipeline_mode = #tpu.pipeline_mode<synchronous>, transform_indices = @transform_2, window_bounds = array<i64: 32, 1>}, {pipeline_mode = #tpu.pipeline_mode<synchronous>, transform_indices = @transform_3, window_bounds = array<i64: 12, 32>}, {pipeline_mode = #tpu.pipeline_mode<synchronous>, transform_indices = @transform_4, window_bounds = array<i64: 12, 1>}, {transform_indices = @transform_5, window_bounds = array<i64: 9, 128>}, {transform_indices = @transform_6, window_bounds = array<i64: 1, 8, 5>}, {transform_indices = @transform_7, window_bounds = array<i64: 1, 5, 8>}, {transform_indices = @transform_8, window_bounds = array<i64: 1, 1, 1>}, {transform_indices = @transform_9, window_bounds = array<i64: 1, 1, 1>}]} {
    %c0_i32 = arith.constant 0 : i32
    %0 = arith.cmpi eq, %arg1, %c0_i32 : i32
    %1 = arith.extui %0 : i1 to i32
    %c0_i32_0 = arith.constant 0 : i32
    %2 = arith.cmpi ne, %1, %c0_i32_0 : i32
    scf.if %2 {
      %cst_78 = arith.constant 0.000000e+00 : f32
      %246 = vector.broadcast %cst_78 : f32 to vector<1x1xf32>
      %c0_79 = arith.constant 0 : index
      %c0_80 = arith.constant 0 : index
      %247 = vector.load %arg12[%c0_79, %c0_80] : memref<1x1xf32, #tpu.memory_space<vmem>>, vector<1x1xf32>
      tpu.vector_store %arg12[%c0_79, %c0_80], %246 {strides = array<i32>} : memref<1x1xf32, #tpu.memory_space<vmem>>, vector<1x1xf32>,
      %cst_81 = arith.constant 0.000000e+00 : f32
      %248 = vector.broadcast %cst_81 : f32 to vector<1x1xf32>
      %c0_82 = arith.constant 0 : index
      %c0_83 = arith.constant 0 : index
      %249 = vector.load %arg13[%c0_82, %c0_83] : memref<1x1xf32, #tpu.memory_space<vmem>>, vector<1x1xf32>
      tpu.vector_store %arg13[%c0_82, %c0_83], %248 {strides = array<i32>} : memref<1x1xf32, #tpu.memory_space<vmem>>, vector<1x1xf32>,
      %cst_84 = arith.constant 0.000000e+00 : f32
      %250 = vector.broadcast %cst_84 : f32 to vector<1x1xf32>
      %c0_85 = arith.constant 0 : index
      %c0_86 = arith.constant 0 : index
      %251 = vector.load %arg14[%c0_85, %c0_86] : memref<1x1xf32, #tpu.memory_space<vmem>>, vector<1x1xf32>
      tpu.vector_store %arg14[%c0_85, %c0_86], %250 {strides = array<i32>} : memref<1x1xf32, #tpu.memory_space<vmem>>, vector<1x1xf32>,
    } else {
    }
    %c0 = arith.constant 0 : index
    %c0_1 = arith.constant 0 : index
    %c0_2 = arith.constant 0 : index
    %3 = vector.load %arg2[%c0, %c0_1, %c0_2] : memref<1x4x128xbf16, #tpu.memory_space<vmem>>, vector<1x4x128xbf16>
    %4 = vector.shape_cast %3 : vector<1x4x128xbf16> to vector<4x128xbf16>
    %c0_3 = arith.constant 0 : index
    %c0_4 = arith.constant 0 : index
    %5 = vector.load %arg3[%c0_3, %c0_4] : memref<32x4xbf16, #tpu.memory_space<vmem>>, vector<32x4xbf16>
    %cst = arith.constant dense<0.000000e+00> : vector<32x128xf32>
    %6 = tpu.matmul %5, %4, %cst {dimension_numbers = #tpu.dot_dimension_numbers<[1], [0], [0], [1], [0, 0, 1, 1], [], []>} : vector<32x4xbf16>, vector<4x128xbf16>, vector<32x128xf32> -> vector<32x128xf32>
    %c0_5 = arith.constant 0 : index
    %c0_6 = arith.constant 0 : index
    %7 = vector.load %arg4[%c0_5, %c0_6] : memref<32x1xf32, #tpu.memory_space<vmem>>, vector<32x1xf32>
    %8 = vector.broadcast %7 : vector<32x1xf32> to vector<32x128xf32>
    %9 = arith.addf %6, %8 : vector<32x128xf32>
    %cst_7 = arith.constant 0.000000e+00 : f32
    %10 = vector.broadcast %cst_7 : f32 to vector<32x128xf32>
    %11 = arith.maximumf %9, %10 : vector<32x128xf32>
    %c0_8 = arith.constant 0 : index
    %c0_9 = arith.constant 0 : index
    %12 = vector.load %arg5[%c0_8, %c0_9] : memref<12x32xbf16, #tpu.memory_space<vmem>>, vector<12x32xbf16>
    %13 = arith.truncf %11 : vector<32x128xf32> to vector<32x128xbf16>
    %cst_10 = arith.constant dense<0.000000e+00> : vector<12x128xf32>
    %14 = tpu.matmul %12, %13, %cst_10 {dimension_numbers = #tpu.dot_dimension_numbers<[1], [0], [0], [1], [0, 0, 1, 1], [], []>} : vector<12x32xbf16>, vector<32x128xbf16>, vector<12x128xf32> -> vector<12x128xf32>
    %c0_11 = arith.constant 0 : index
    %c0_12 = arith.constant 0 : index
    %15 = vector.load %arg6[%c0_11, %c0_12] : memref<12x1xf32, #tpu.memory_space<vmem>>, vector<12x1xf32>
    %16 = vector.broadcast %15 : vector<12x1xf32> to vector<12x128xf32>
    %17 = arith.addf %14, %16 : vector<12x128xf32>
    %18 = vector.extract_strided_slice %17 {offsets = [0, 0], sizes = [8, 128], strides = [1, 1]} : vector<12x128xf32> to vector<8x128xf32>
    %19 = vector.extract_strided_slice %17 {offsets = [8, 0], sizes = [4, 128], strides = [1, 1]} : vector<12x128xf32> to vector<4x128xf32>
    %20 = arith.negf %18 : vector<8x128xf32>
    %21 = math.exp %20 : vector<8x128xf32>
    %cst_13 = arith.constant 1.000000e+00 : f32
    %22 = vector.broadcast %cst_13 : f32 to vector<8x128xf32>
    %23 = arith.addf %22, %21 : vector<8x128xf32>
    %24 = arith.divf %22, %23 : vector<8x128xf32>
    %cst_14 = arith.constant 9.99999974E-5 : f32
    %cst_15 = arith.constant 0.999899983 : f32
    %25 = vector.broadcast %cst_14 : f32 to vector<8x128xf32>
    %26 = arith.maximumf %25, %24 : vector<8x128xf32>
    %27 = vector.broadcast %cst_15 : f32 to vector<8x128xf32>
    %28 = arith.minimumf %27, %26 : vector<8x128xf32>
    %c0_16 = arith.constant 0 : index
    %c0_17 = arith.constant 0 : index
    %29 = vector.load %arg7[%c0_16, %c0_17] : memref<9x128xf32, #tpu.memory_space<vmem>>, vector<9x128xf32>
    %30 = vector.extract_strided_slice %29 {offsets = [0, 0], sizes = [1, 128], strides = [1, 1]} : vector<9x128xf32> to vector<1x128xf32>
    %31 = vector.extract_strided_slice %29 {offsets = [1, 0], sizes = [1, 128], strides = [1, 1]} : vector<9x128xf32> to vector<1x128xf32>
    %32 = vector.extract_strided_slice %29 {offsets = [2, 0], sizes = [1, 128], strides = [1, 1]} : vector<9x128xf32> to vector<1x128xf32>
    %33 = vector.extract_strided_slice %29 {offsets = [3, 0], sizes = [1, 128], strides = [1, 1]} : vector<9x128xf32> to vector<1x128xf32>
    %34 = vector.extract_strided_slice %29 {offsets = [4, 0], sizes = [1, 128], strides = [1, 1]} : vector<9x128xf32> to vector<1x128xf32>
    %35 = vector.extract_strided_slice %29 {offsets = [5, 0], sizes = [1, 128], strides = [1, 1]} : vector<9x128xf32> to vector<1x128xf32>
    %36 = vector.extract_strided_slice %29 {offsets = [6, 0], sizes = [1, 128], strides = [1, 1]} : vector<9x128xf32> to vector<1x128xf32>
    %37 = vector.extract_strided_slice %29 {offsets = [7, 0], sizes = [1, 128], strides = [1, 1]} : vector<9x128xf32> to vector<1x128xf32>
    %38 = vector.extract_strided_slice %29 {offsets = [8, 0], sizes = [1, 128], strides = [1, 1]} : vector<9x128xf32> to vector<1x128xf32>
    %c0_18 = arith.constant 0 : index
    %c0_19 = arith.constant 0 : index
    %c0_20 = arith.constant 0 : index
    %39 = vector.load %arg8[%c0_18, %c0_19, %c0_20] : memref<1x8x5xf32, #tpu.memory_space<vmem>>, vector<1x8x5xf32>
    %40 = vector.shape_cast %39 : vector<1x8x5xf32> to vector<8x5xf32>
    %41 = vector.extract_strided_slice %40 {offsets = [0, 0], sizes = [8, 1], strides = [1, 1]} : vector<8x5xf32> to vector<8x1xf32>
    %42 = vector.extract_strided_slice %40 {offsets = [0, 1], sizes = [8, 1], strides = [1, 1]} : vector<8x5xf32> to vector<8x1xf32>
    %43 = vector.extract_strided_slice %40 {offsets = [0, 2], sizes = [8, 1], strides = [1, 1]} : vector<8x5xf32> to vector<8x1xf32>
    %44 = vector.extract_strided_slice %40 {offsets = [0, 3], sizes = [8, 1], strides = [1, 1]} : vector<8x5xf32> to vector<8x1xf32>
    %45 = vector.extract_strided_slice %40 {offsets = [0, 4], sizes = [8, 1], strides = [1, 1]} : vector<8x5xf32> to vector<8x1xf32>
    %cst_21 = arith.constant -1.000000e+00 : f32
    %46 = vector.broadcast %cst_21 : f32 to vector<8x1xf32>
    %47 = arith.cmpf one, %45, %46 : vector<8x1xf32>
    %48 = arith.subf %43, %41 : vector<8x1xf32>
    %49 = arith.subf %44, %42 : vector<8x1xf32>
    %50 = arith.mulf %48, %49 : vector<8x1xf32>
    %51 = vector.broadcast %33 : vector<1x128xf32> to vector<8x128xf32>
    %52 = vector.broadcast %43 : vector<8x1xf32> to vector<8x128xf32>
    %53 = arith.minimumf %51, %52 : vector<8x128xf32>
    %54 = vector.broadcast %31 : vector<1x128xf32> to vector<8x128xf32>
    %55 = vector.broadcast %41 : vector<8x1xf32> to vector<8x128xf32>
    %56 = arith.maximumf %54, %55 : vector<8x128xf32>
    %57 = arith.subf %53, %56 : vector<8x128xf32>
    %cst_22 = arith.constant 0.000000e+00 : f32
    %58 = vector.broadcast %cst_22 : f32 to vector<8x128xf32>
    %59 = arith.maximumf %57, %58 : vector<8x128xf32>
    %60 = vector.broadcast %32 : vector<1x128xf32> to vector<8x128xf32>
    %61 = vector.broadcast %44 : vector<8x1xf32> to vector<8x128xf32>
    %62 = arith.minimumf %60, %61 : vector<8x128xf32>
    %63 = vector.broadcast %30 : vector<1x128xf32> to vector<8x128xf32>
    %64 = vector.broadcast %42 : vector<8x1xf32> to vector<8x128xf32>
    %65 = arith.maximumf %63, %64 : vector<8x128xf32>
    %66 = arith.subf %62, %65 : vector<8x128xf32>
    %cst_23 = arith.constant 0.000000e+00 : f32
    %67 = vector.broadcast %cst_23 : f32 to vector<8x128xf32>
    %68 = arith.maximumf %66, %67 : vector<8x128xf32>
    %69 = arith.mulf %59, %68 : vector<8x128xf32>
    %70 = vector.broadcast %34 : vector<1x128xf32> to vector<8x128xf32>
    %71 = vector.broadcast %50 : vector<8x1xf32> to vector<8x128xf32>
    %72 = arith.addf %70, %71 : vector<8x128xf32>
    %73 = arith.subf %72, %69 : vector<8x128xf32>
    %cst_24 = arith.constant 9.99999993E-9 : f32
    %74 = vector.broadcast %cst_24 : f32 to vector<8x128xf32>
    %75 = arith.maximumf %73, %74 : vector<8x128xf32>
    %76 = tpu.reciprocal %75 {approx = true} : vector<8x128xf32> -> vector<8x128xf32>
    %77 = arith.mulf %69, %76 : vector<8x128xf32>
    %cst_25 = arith.constant -1.000000e+00 : f32
    %78 = vector.shape_cast %47 : vector<8x1xi1> to vector<8x1xi1>
    %79 = vector.broadcast %78 : vector<8x1xi1> to vector<8x128xi1>
    %80 = vector.broadcast %cst_25 : f32 to vector<8x128xf32>
    %81 = arith.select %79, %77, %80 : vector<8x128xi1>, vector<8x128xf32>
    %cst_26 = arith.constant dense<0xFF800000> : vector<128xf32>
    %82 = vector.multi_reduction <maximumf>, %81, %cst_26 [0] : vector<8x128xf32> to vector<128xf32>
    %83 = vector.shape_cast %82 : vector<128xf32> to vector<1x128xf32>
    %84 = tpu.iota {dimensions = array<i32: 0>} : vector<8x128xi32>
    %85 = arith.sitofp %84 : vector<8x128xi32> to vector<8x128xf32>
    %86 = vector.broadcast %83 : vector<1x128xf32> to vector<8x128xf32>
    %87 = arith.cmpf oge, %81, %86 : vector<8x128xf32>
    %cst_27 = arith.constant 8.000000e+00 : f32
    %88 = vector.broadcast %cst_27 : f32 to vector<8x128xf32>
    %89 = arith.select %87, %85, %88 : vector<8x128xi1>, vector<8x128xf32>
    %cst_28 = arith.constant dense<0x7F800000> : vector<128xf32>
    %90 = vector.multi_reduction <minimumf>, %89, %cst_28 [0] : vector<8x128xf32> to vector<128xf32>
    %91 = vector.shape_cast %90 : vector<128xf32> to vector<1x128xf32>
    %92 = vector.broadcast %91 : vector<1x128xf32> to vector<8x128xf32>
    %93 = arith.cmpf oeq, %85, %92 : vector<8x128xf32>
    %94 = arith.extui %93 : vector<8x128xi1> to vector<8x128xi32>
    %95 = arith.sitofp %94 : vector<8x128xi32> to vector<8x128xf32>
    %c0_29 = arith.constant 0 : index
    %c0_30 = arith.constant 0 : index
    %c0_31 = arith.constant 0 : index
    %96 = vector.load %arg9[%c0_29, %c0_30, %c0_31] : memref<1x5x8xf32, #tpu.memory_space<vmem>>, vector<1x5x8xf32>
    %97 = vector.shape_cast %96 : vector<1x5x8xf32> to vector<5x8xf32>
    %cst_32 = arith.constant dense<0.000000e+00> : vector<5x128xf32>
    %98 = tpu.matmul %97, %95, %cst_32 {dimension_numbers = #tpu.dot_dimension_numbers<[1], [0], [0], [1], [0, 0, 1, 1], [], []>} : vector<5x8xf32>, vector<8x128xf32>, vector<5x128xf32> -> vector<5x128xf32>
    %99 = vector.extract_strided_slice %98 {offsets = [0, 0], sizes = [1, 128], strides = [1, 1]} : vector<5x128xf32> to vector<1x128xf32>
    %100 = vector.extract_strided_slice %98 {offsets = [1, 0], sizes = [1, 128], strides = [1, 1]} : vector<5x128xf32> to vector<1x128xf32>
    %101 = vector.extract_strided_slice %98 {offsets = [2, 0], sizes = [1, 128], strides = [1, 1]} : vector<5x128xf32> to vector<1x128xf32>
    %102 = vector.extract_strided_slice %98 {offsets = [3, 0], sizes = [1, 128], strides = [1, 1]} : vector<5x128xf32> to vector<1x128xf32>
    %103 = vector.extract_strided_slice %98 {offsets = [4, 0], sizes = [1, 128], strides = [1, 1]} : vector<5x128xf32> to vector<1x128xf32>
    %cst_33 = arith.constant 5.000000e-01 : f32
    %104 = vector.broadcast %cst_33 : f32 to vector<1x128xf32>
    %105 = arith.cmpf oge, %83, %104 : vector<1x128xf32>
    %cst_34 = arith.constant 4.000000e-01 : f32
    %106 = vector.broadcast %cst_34 : f32 to vector<1x128xf32>
    %107 = arith.cmpf olt, %83, %106 : vector<1x128xf32>
    %108 = arith.extui %105 : vector<1x128xi1> to vector<1x128xi32>
    %109 = arith.sitofp %108 : vector<1x128xi32> to vector<1x128xf32>
    %110 = vector.shape_cast %109 : vector<1x128xf32> to vector<1x1x128xf32>
    %cst_35 = arith.constant dense<0.000000e+00> : vector<1xf32>
    %111 = vector.multi_reduction <add>, %110, %cst_35 [1, 2] : vector<1x1x128xf32> to vector<1xf32>
    %112 = vector.shape_cast %111 : vector<1xf32> to vector<1x1x1xf32>
    %113 = vector.extract %112[0, 0, 0] : f32 from vector<1x1x1xf32>
    %114 = tpu.iota {dimensions = array<i32: 0>} : vector<8x128xi32>
    %115 = arith.sitofp %114 : vector<8x128xi32> to vector<8x128xf32>
    %116 = math.roundeven %103 : vector<1x128xf32>
    %117 = vector.broadcast %116 : vector<1x128xf32> to vector<8x128xf32>
    %118 = arith.cmpf oeq, %115, %117 : vector<8x128xf32>
    %119 = arith.extui %118 : vector<8x128xi1> to vector<8x128xi32>
    %120 = arith.sitofp %119 : vector<8x128xi32> to vector<8x128xf32>
    %cst_36 = arith.constant 0.000000e+00 : f32
    %cst_37 = arith.constant -1.000000e+00 : f32
    %121 = vector.broadcast %cst_36 : f32 to vector<1x128xf32>
    %122 = vector.broadcast %cst_37 : f32 to vector<1x128xf32>
    %123 = arith.select %107, %121, %122 : vector<1x128xi1>, vector<1x128xf32>
    %124 = vector.shape_cast %105 : vector<1x128xi1> to vector<1x128xi1>
    %125 = vector.broadcast %124 : vector<1x128xi1> to vector<8x128xi1>
    %126 = vector.shape_cast %123 : vector<1x128xf32> to vector<1x128xf32>
    %127 = vector.broadcast %126 : vector<1x128xf32> to vector<8x128xf32>
    %128 = arith.select %125, %120, %127 : vector<8x128xi1>, vector<8x128xf32>
    %cst_38 = arith.constant 1.000000e+00 : f32
    %129 = vector.broadcast %cst_38 : f32 to vector<8x128xf32>
    %130 = arith.cmpf oeq, %128, %129 : vector<8x128xf32>
    %cst_39 = arith.constant 2.500000e-01 : f32
    %cst_40 = arith.constant 7.500000e-01 : f32
    %131 = vector.broadcast %cst_39 : f32 to vector<8x128xf32>
    %132 = vector.broadcast %cst_40 : f32 to vector<8x128xf32>
    %133 = arith.select %130, %131, %132 : vector<8x128xi1>, vector<8x128xf32>
    %cst_41 = arith.constant 1.000000e+00 : f32
    %134 = vector.broadcast %cst_41 : f32 to vector<8x128xf32>
    %135 = arith.subf %134, %28 : vector<8x128xf32>
    %136 = arith.select %130, %135, %28 : vector<8x128xi1>, vector<8x128xf32>
    %137 = arith.mulf %133, %136 : vector<8x128xf32>
    %138 = arith.mulf %137, %136 : vector<8x128xf32>
    %139 = math.log %28 : vector<8x128xf32>
    %140 = arith.mulf %128, %139 : vector<8x128xf32>
    %cst_42 = arith.constant 1.000000e+00 : f32
    %141 = vector.broadcast %cst_42 : f32 to vector<8x128xf32>
    %142 = arith.subf %141, %128 : vector<8x128xf32>
    %cst_43 = arith.constant 1.000000e+00 : f32
    %143 = vector.broadcast %cst_43 : f32 to vector<8x128xf32>
    %144 = arith.subf %143, %28 : vector<8x128xf32>
    %145 = math.log %144 : vector<8x128xf32>
    %146 = arith.mulf %142, %145 : vector<8x128xf32>
    %147 = arith.addf %140, %146 : vector<8x128xf32>
    %cst_44 = arith.constant 0.000000e+00 : f32
    %148 = vector.broadcast %cst_44 : f32 to vector<8x128xf32>
    %149 = arith.subf %148, %147 : vector<8x128xf32>
    %cst_45 = arith.constant -1.000000e+00 : f32
    %150 = vector.broadcast %cst_45 : f32 to vector<8x128xf32>
    %151 = arith.cmpf one, %128, %150 : vector<8x128xf32>
    %152 = arith.mulf %138, %149 : vector<8x128xf32>
    %cst_46 = arith.constant 0.000000e+00 : f32
    %153 = vector.broadcast %cst_46 : f32 to vector<8x128xf32>
    %154 = arith.select %151, %152, %153 : vector<8x128xi1>, vector<8x128xf32>
    %155 = vector.shape_cast %154 : vector<8x128xf32> to vector<1x8x128xf32>
    %cst_47 = arith.constant dense<0.000000e+00> : vector<1xf32>
    %156 = vector.multi_reduction <add>, %155, %cst_47 [1, 2] : vector<1x8x128xf32> to vector<1xf32>
    %157 = vector.shape_cast %156 : vector<1xf32> to vector<1x1x1xf32>
    %158 = vector.extract %157[0, 0, 0] : f32 from vector<1x1x1xf32>
    %159 = arith.subf %101, %99 : vector<1x128xf32>
    %160 = arith.subf %102, %100 : vector<1x128xf32>
    %cst_48 = arith.constant 5.000000e-01 : f32
    %161 = vector.broadcast %cst_48 : f32 to vector<1x128xf32>
    %162 = arith.mulf %161, %159 : vector<1x128xf32>
    %163 = arith.addf %99, %162 : vector<1x128xf32>
    %cst_49 = arith.constant 5.000000e-01 : f32
    %164 = vector.broadcast %cst_49 : f32 to vector<1x128xf32>
    %165 = arith.mulf %164, %160 : vector<1x128xf32>
    %166 = arith.addf %100, %165 : vector<1x128xf32>
    %cst_50 = arith.constant 1.000000e+00 : f32
    %167 = vector.broadcast %cst_50 : f32 to vector<1x128xf32>
    %168 = arith.maximumf %159, %167 : vector<1x128xf32>
    %cst_51 = arith.constant 1.000000e+00 : f32
    %169 = vector.broadcast %cst_51 : f32 to vector<1x128xf32>
    %170 = arith.maximumf %160, %169 : vector<1x128xf32>
    %171 = arith.subf %163, %35 : vector<1x128xf32>
    %172 = arith.mulf %171, %37 : vector<1x128xf32>
    %173 = arith.subf %166, %36 : vector<1x128xf32>
    %174 = arith.mulf %173, %38 : vector<1x128xf32>
    %175 = arith.mulf %168, %37 : vector<1x128xf32>
    %176 = math.log %175 : vector<1x128xf32>
    %177 = arith.mulf %170, %38 : vector<1x128xf32>
    %178 = math.log %177 : vector<1x128xf32>
    %179 = vector.extract_strided_slice %19 {offsets = [0, 0], sizes = [1, 128], strides = [1, 1]} : vector<4x128xf32> to vector<1x128xf32>
    %180 = arith.subf %174, %179 : vector<1x128xf32>
    %181 = math.absf %180 : vector<1x128xf32>
    %cst_52 = arith.constant 0.111111112 : f32
    %182 = vector.broadcast %cst_52 : f32 to vector<1x128xf32>
    %183 = arith.cmpf ole, %181, %182 : vector<1x128xf32>
    %cst_53 = arith.constant 4.500000e+00 : f32
    %184 = vector.broadcast %cst_53 : f32 to vector<1x128xf32>
    %185 = arith.mulf %184, %181 : vector<1x128xf32>
    %186 = arith.mulf %185, %181 : vector<1x128xf32>
    %cst_54 = arith.constant 0.055555556 : f32
    %187 = vector.broadcast %cst_54 : f32 to vector<1x128xf32>
    %188 = arith.subf %181, %187 : vector<1x128xf32>
    %189 = arith.select %183, %186, %188 : vector<1x128xi1>, vector<1x128xf32>
    %190 = vector.extract_strided_slice %19 {offsets = [1, 0], sizes = [1, 128], strides = [1, 1]} : vector<4x128xf32> to vector<1x128xf32>
    %191 = arith.subf %172, %190 : vector<1x128xf32>
    %192 = math.absf %191 : vector<1x128xf32>
    %cst_55 = arith.constant 0.111111112 : f32
    %193 = vector.broadcast %cst_55 : f32 to vector<1x128xf32>
    %194 = arith.cmpf ole, %192, %193 : vector<1x128xf32>
    %cst_56 = arith.constant 4.500000e+00 : f32
    %195 = vector.broadcast %cst_56 : f32 to vector<1x128xf32>
    %196 = arith.mulf %195, %192 : vector<1x128xf32>
    %197 = arith.mulf %196, %192 : vector<1x128xf32>
    %cst_57 = arith.constant 0.055555556 : f32
    %198 = vector.broadcast %cst_57 : f32 to vector<1x128xf32>
    %199 = arith.subf %192, %198 : vector<1x128xf32>
    %200 = arith.select %194, %197, %199 : vector<1x128xi1>, vector<1x128xf32>
    %201 = arith.addf %189, %200 : vector<1x128xf32>
    %202 = vector.extract_strided_slice %19 {offsets = [2, 0], sizes = [1, 128], strides = [1, 1]} : vector<4x128xf32> to vector<1x128xf32>
    %203 = arith.subf %178, %202 : vector<1x128xf32>
    %204 = math.absf %203 : vector<1x128xf32>
    %cst_58 = arith.constant 0.111111112 : f32
    %205 = vector.broadcast %cst_58 : f32 to vector<1x128xf32>
    %206 = arith.cmpf ole, %204, %205 : vector<1x128xf32>
    %cst_59 = arith.constant 4.500000e+00 : f32
    %207 = vector.broadcast %cst_59 : f32 to vector<1x128xf32>
    %208 = arith.mulf %207, %204 : vector<1x128xf32>
    %209 = arith.mulf %208, %204 : vector<1x128xf32>
    %cst_60 = arith.constant 0.055555556 : f32
    %210 = vector.broadcast %cst_60 : f32 to vector<1x128xf32>
    %211 = arith.subf %204, %210 : vector<1x128xf32>
    %212 = arith.select %206, %209, %211 : vector<1x128xi1>, vector<1x128xf32>
    %213 = arith.addf %201, %212 : vector<1x128xf32>
    %214 = vector.extract_strided_slice %19 {offsets = [3, 0], sizes = [1, 128], strides = [1, 1]} : vector<4x128xf32> to vector<1x128xf32>
    %215 = arith.subf %176, %214 : vector<1x128xf32>
    %216 = math.absf %215 : vector<1x128xf32>
    %cst_61 = arith.constant 0.111111112 : f32
    %217 = vector.broadcast %cst_61 : f32 to vector<1x128xf32>
    %218 = arith.cmpf ole, %216, %217 : vector<1x128xf32>
    %cst_62 = arith.constant 4.500000e+00 : f32
    %219 = vector.broadcast %cst_62 : f32 to vector<1x128xf32>
    %220 = arith.mulf %219, %216 : vector<1x128xf32>
    %221 = arith.mulf %220, %216 : vector<1x128xf32>
    %cst_63 = arith.constant 0.055555556 : f32
    %222 = vector.broadcast %cst_63 : f32 to vector<1x128xf32>
    %223 = arith.subf %216, %222 : vector<1x128xf32>
    %224 = arith.select %218, %221, %223 : vector<1x128xi1>, vector<1x128xf32>
    %225 = arith.addf %213, %224 : vector<1x128xf32>
    %226 = arith.mulf %225, %109 : vector<1x128xf32>
    %227 = vector.shape_cast %226 : vector<1x128xf32> to vector<1x1x128xf32>
    %cst_64 = arith.constant dense<0.000000e+00> : vector<1xf32>
    %228 = vector.multi_reduction <add>, %227, %cst_64 [1, 2] : vector<1x1x128xf32> to vector<1xf32>
    %229 = vector.shape_cast %228 : vector<1xf32> to vector<1x1x1xf32>
    %230 = vector.extract %229[0, 0, 0] : f32 from vector<1x1x1xf32>
    %c0_65 = arith.constant 0 : index
    %c0_66 = arith.constant 0 : index
    %231 = vector.load %arg12[%c0_65, %c0_66] : memref<1x1xf32, #tpu.memory_space<vmem>>, vector<1x1xf32>
    %232 = vector.broadcast %158 : f32 to vector<1x1xf32>
    %233 = arith.addf %231, %232 : vector<1x1xf32>
    %c0_67 = arith.constant 0 : index
    %c0_68 = arith.constant 0 : index
    %234 = vector.load %arg12[%c0_67, %c0_68] : memref<1x1xf32, #tpu.memory_space<vmem>>, vector<1x1xf32>
    tpu.vector_store %arg12[%c0_67, %c0_68], %233 {strides = array<i32>} : memref<1x1xf32, #tpu.memory_space<vmem>>, vector<1x1xf32>,
    %c0_69 = arith.constant 0 : index
    %c0_70 = arith.constant 0 : index
    %235 = vector.load %arg13[%c0_69, %c0_70] : memref<1x1xf32, #tpu.memory_space<vmem>>, vector<1x1xf32>
    %236 = vector.broadcast %230 : f32 to vector<1x1xf32>
    %237 = arith.addf %235, %236 : vector<1x1xf32>
    %c0_71 = arith.constant 0 : index
    %c0_72 = arith.constant 0 : index
    %238 = vector.load %arg13[%c0_71, %c0_72] : memref<1x1xf32, #tpu.memory_space<vmem>>, vector<1x1xf32>
    tpu.vector_store %arg13[%c0_71, %c0_72], %237 {strides = array<i32>} : memref<1x1xf32, #tpu.memory_space<vmem>>, vector<1x1xf32>,
    %c0_73 = arith.constant 0 : index
    %c0_74 = arith.constant 0 : index
    %239 = vector.load %arg14[%c0_73, %c0_74] : memref<1x1xf32, #tpu.memory_space<vmem>>, vector<1x1xf32>
    %240 = vector.broadcast %113 : f32 to vector<1x1xf32>
    %241 = arith.addf %239, %240 : vector<1x1xf32>
    %c0_75 = arith.constant 0 : index
    %c0_76 = arith.constant 0 : index
    %242 = vector.load %arg14[%c0_75, %c0_76] : memref<1x1xf32, #tpu.memory_space<vmem>>, vector<1x1xf32>
    tpu.vector_store %arg14[%c0_75, %c0_76], %241 {strides = array<i32>} : memref<1x1xf32, #tpu.memory_space<vmem>>, vector<1x1xf32>,
    %c1_i32 = arith.constant 1 : i32
    %243 = arith.cmpi eq, %arg1, %c1_i32 : i32
    %244 = arith.extui %243 : i1 to i32
    %c0_i32_77 = arith.constant 0 : i32
    %245 = arith.cmpi ne, %244, %c0_i32_77 : i32
    scf.if %245 {
      %c0_78 = arith.constant 0 : index
      %c0_79 = arith.constant 0 : index
      %246 = vector.load %arg14[%c0_78, %c0_79] : memref<1x1xf32, #tpu.memory_space<vmem>>, vector<1x1xf32>
      %c0_80 = arith.constant 0 : index
      %c0_81 = arith.constant 0 : index
      %247 = vector.load %arg12[%c0_80, %c0_81] : memref<1x1xf32, #tpu.memory_space<vmem>>, vector<1x1xf32>
      %cst_82 = arith.constant 1.000000e+00 : f32
      %248 = vector.broadcast %cst_82 : f32 to vector<1x1xf32>
      %249 = arith.maximumf %246, %248 : vector<1x1xf32>
      %250 = arith.divf %247, %249 : vector<1x1xf32>
      %c0_83 = arith.constant 0 : index
      %c0_84 = arith.constant 0 : index
      %251 = vector.load %arg13[%c0_83, %c0_84] : memref<1x1xf32, #tpu.memory_space<vmem>>, vector<1x1xf32>
      %cst_85 = arith.constant 4.000000e+00 : f32
      %252 = vector.broadcast %cst_85 : f32 to vector<1x1xf32>
      %253 = arith.mulf %246, %252 : vector<1x1xf32>
      %cst_86 = arith.constant 1.000000e+00 : f32
      %254 = vector.broadcast %cst_86 : f32 to vector<1x1xf32>
      %255 = arith.maximumf %253, %254 : vector<1x1xf32>
      %256 = arith.divf %251, %255 : vector<1x1xf32>
      %257 = vector.shape_cast %250 : vector<1x1xf32> to vector<1x1x1xf32>
      %c0_87 = arith.constant 0 : index
      %c0_88 = arith.constant 0 : index
      %c0_89 = arith.constant 0 : index
      %258 = vector.load %arg10[%c0_87, %c0_88, %c0_89] : memref<1x1x1xf32, #tpu.memory_space<vmem>>, vector<1x1x1xf32>
      tpu.vector_store %arg10[%c0_87, %c0_88, %c0_89], %257 {strides = array<i32>} : memref<1x1x1xf32, #tpu.memory_space<vmem>>, vector<1x1x1xf32>,
      %259 = vector.shape_cast %256 : vector<1x1xf32> to vector<1x1x1xf32>
      %c0_90 = arith.constant 0 : index
      %c0_91 = arith.constant 0 : index
      %c0_92 = arith.constant 0 : index
      %260 = vector.load %arg11[%c0_90, %c0_91, %c0_92] : memref<1x1x1xf32, #tpu.memory_space<vmem>>, vector<1x1x1xf32>
      tpu.vector_store %arg11[%c0_90, %c0_91, %c0_92], %259 {strides = array<i32>} : memref<1x1x1xf32, #tpu.memory_space<vmem>>, vector<1x1x1xf32>,
    } else {
    }
    return
  }
  func.func @transform_0(%arg0: i32, %arg1: i32) -> (i32, i32, i32) {
    %c0_i32 = arith.constant 0 : i32
    %c0_i32_0 = arith.constant 0 : i32
    return %arg0, %c0_i32, %arg1 : i32, i32, i32
  }
  func.func @transform_1(%arg0: i32, %arg1: i32) -> (i32, i32) {
    %c0_i32 = arith.constant 0 : i32
    %c0_i32_0 = arith.constant 0 : i32
    %c0_i32_1 = arith.constant 0 : i32
    return %c0_i32, %c0_i32_0 : i32, i32
  }
  func.func @transform_2(%arg0: i32, %arg1: i32) -> (i32, i32) {
    %c0_i32 = arith.constant 0 : i32
    %c0_i32_0 = arith.constant 0 : i32
    %c0_i32_1 = arith.constant 0 : i32
    return %c0_i32, %c0_i32_0 : i32, i32
  }
  func.func @transform_3(%arg0: i32, %arg1: i32) -> (i32, i32) {
    %c0_i32 = arith.constant 0 : i32
    %c0_i32_0 = arith.constant 0 : i32
    %c0_i32_1 = arith.constant 0 : i32
    return %c0_i32, %c0_i32_0 : i32, i32
  }
  func.func @transform_4(%arg0: i32, %arg1: i32) -> (i32, i32) {
    %c0_i32 = arith.constant 0 : i32
    %c0_i32_0 = arith.constant 0 : i32
    %c0_i32_1 = arith.constant 0 : i32
    return %c0_i32, %c0_i32_0 : i32, i32
  }
  func.func @transform_5(%arg0: i32, %arg1: i32) -> (i32, i32) {
    %c0_i32 = arith.constant 0 : i32
    %c0_i32_0 = arith.constant 0 : i32
    return %c0_i32, %arg1 : i32, i32
  }
  func.func @transform_6(%arg0: i32, %arg1: i32) -> (i32, i32, i32) {
    %c0_i32 = arith.constant 0 : i32
    %c0_i32_0 = arith.constant 0 : i32
    %c0_i32_1 = arith.constant 0 : i32
    return %arg0, %c0_i32, %c0_i32_0 : i32, i32, i32
  }
  func.func @transform_7(%arg0: i32, %arg1: i32) -> (i32, i32, i32) {
    %c0_i32 = arith.constant 0 : i32
    %c0_i32_0 = arith.constant 0 : i32
    %c0_i32_1 = arith.constant 0 : i32
    return %arg0, %c0_i32, %c0_i32_0 : i32, i32, i32
  }
  func.func @transform_8(%arg0: i32, %arg1: i32) -> (i32, i32, i32) {
    %c0_i32 = arith.constant 0 : i32
    %c0_i32_0 = arith.constant 0 : i32
    %c0_i32_1 = arith.constant 0 : i32
    return %arg0, %c0_i32, %c0_i32_0 : i32, i32, i32
  }
  func.func @transform_9(%arg0: i32, %arg1: i32) -> (i32, i32, i32) {
    %c0_i32 = arith.constant 0 : i32
    %c0_i32_0 = arith.constant 0 : i32
    %c0_i32_1 = arith.constant 0 : i32
    return %arg0, %c0_i32, %c0_i32_0 : i32, i32, i32
  }
}

</mosaic_0001>

<bundles_post_ra>
// kernel: model_with_loss_forward.1
= control target key start
LH: loop header
LB: loop body
LE: loop exit
PB: predicated region body
PF: predicated region fallthrough
CT: control target
= control target key end

     0   :  { %s2793_s0 = inlined_call_operand.hbm [shape: bf16[2,4,256], index: 0, kind: input, shape index: {}]   ;;  %s2794_s1 = inlined_call_operand.hbm [shape: bf16[32,4], index: 1, kind: input, shape index: {}]   ;;  %s2795_s2 = inlined_call_operand.hbm [shape: f32[32,1], index: 2, kind: input, shape index: {}]   ;;  %s2796_s3 = inlined_call_operand.hbm [shape: bf16[12,32], index: 3, kind: input, shape index: {}]   ;;  %s2797_s4 = inlined_call_operand.hbm [shape: f32[12,1], index: 4, kind: input, shape index: {}]   ;;  %s2798_s5 = inlined_call_operand.hbm [shape: f32[9,256], index: 5, kind: input, shape index: {}]   ;;  %s2799_s6 = inlined_call_operand.hbm [shape: f32[2,8,5], index: 6, kind: input, shape index: {}]   ;;  %s2800_s7 = inlined_call_operand.hbm [shape: f32[2,5,8], index: 7, kind: input, shape index: {}]   ;;  %s2801_s8 = inlined_call_operand.hbm [shape: f32[2,1,1], index: 8, kind: output, shape index: {0}]   ;;  %s2802_s9 = inlined_call_operand.hbm [shape: f32[2,1,1], index: 9, kind: output, shape index: {1}]  }
   0x1   :  { %2830 = sst [smem:[#allocation39_spill]] %s2793_s0 }
   0x2   :  { %2831 = sst [smem:[#allocation40_spill]] %s2794_s1 }
   0x3   :  { %2832 = sst [smem:[#allocation41_spill]] %s2795_s2 }
   0x4   :  { %2833 = sst [smem:[#allocation42_spill]] %s2796_s3 }
   0x5   :  { %2834 = sst [smem:[#allocation43_spill]] %s2797_s4 }
   0x6   :  { %2835 = sst [smem:[#allocation44_spill]] %s2798_s5 }
   0x7   :  { %2836 = sst [smem:[#allocation45_spill]] %s2799_s6 }
   0x8   :  { %2837 = sst [smem:[#allocation46_spill]] %s2800_s7 }
   0x9   :  { %2838 = sst [smem:[#allocation47_spill]] %s2801_s8 }
   0xa   :  { %2839 = sst [smem:[#allocation48_spill]] %s2802_s9 }
   0xb   :  { %15 = vsyncpa [#allocation6], 0 }
   0xc   :  { %17 = vsyncpa [#allocation6 + $0x1], 0 }
   0xd   :  { %18 = vsyncpa [#allocation9], 0 }
   0xe   :  { %19 = vsyncpa [#allocation12], 0 }
   0xf   :  { %20 = vsyncpa [#allocation15], 0 }
  0x10   :  { %22 = vsyncpa [#allocation15 + $0x1], 0 }
  0x11   :  { %23 = vsyncpa [#allocation18], 0 }
  0x12   :  { %25 = vsyncpa [#allocation18 + $0x1], 0 }
  0x13   :  { %26 = vsyncpa [#allocation7], 0 }
  0x14   :  { %28 = vsyncpa [#allocation7 + $0x1], 0 }
  0x15   :  { %29 = vsyncpa [#allocation21], 0 }
  0x16   :  { %31 = vsyncpa [#allocation21 + $0x1], 0  ;;  %s2136_s30 = smov 0   ;;  %s2138_s10 = smov 0  }
  0x17   :  { %s2140_s11 = smov 0   ;;  %s2142_s12 = smov 0  }
  0x18   :  { %s2144_s13 = smov 0   ;;  %s2146_s14 = smov 0  }
  0x19   :  { %s2148_s15 = smov 0   ;;  %s2150_s16 = smov 0  }
  0x1a   :  { %s2152_s17 = smov 0   ;;  %s2154_s18 = smov 0  }
  0x1b   :  { %s2156_s19 = smov 0   ;;  %s2158_s20 = smov 0  }
  0x1c   :  { %s2160_s21 = smov 0   ;;  %s2162_s22 = smov 0  }
  0x1d LB: > { %2840 = sst [smem:[#allocation30_spill]] %s2004_s30  ;;  %s2207_s23 = sadd.s32 4294967295, %s2056_s22   ;;  %s2056_s22 = sphi %s2162_s22, %s37_s22   ;;  %s2052_s21 = sphi %s2160_s21, %s2923_s21   ;;  %s2048_s20 = sphi %s2158_s20, %s2922_s20   ;;  %s2044_s19 = sphi %s2156_s19, %s2921_s19   ;;  %s2040_s18 = sphi %s2154_s18, %s2920_s18   ;;  %s2036_s17 = sphi %s2152_s17, %s2919_s17   ;;  %s2032_s16 = sphi %s2150_s16, %s2918_s16   ;;  %s2028_s15 = sphi %s2148_s15, %s2917_s15   ;;  %s2024_s14 = sphi %s2146_s14, %s2916_s14   ;;  %s2020_s13 = sphi %s2144_s13, %s2915_s13   ;;  %s2016_s12 = sphi %s2142_s12, %s2911_s12   ;;  %s2012_s11 = sphi %s2140_s11, %s2914_s11   ;;  %s2008_s10 = sphi %s2138_s10, %s2910_s10   ;;  %s2004_s30 = sphi %s2136_s30, %s2909_s30  }
  0x1e   : > { %2841 = sst [smem:[#allocation31_spill]] %s2008_s10  ;;  %p1310_p0 = scmp.ge.s32.totalorder %s2056_s22, 1 }
  0x1f   : > { %2842 = sst [smem:[#allocation32_spill]] %s2012_s11  ;;  %p2808_p1 = scmp.eq.s32.totalorder %s2207_s23, 0 }
  0x20   : > { %2843 = sst [smem:[#allocation33_spill]] %s2020_s13  ;;  %p296_p2 = scmp.lt.s32.totalorder %s2056_s22, 5 }
  0x21   : > { %2844 = sst [smem:[#allocation34_spill]] %s2040_s18  ;;  %s2058_s25 = smov [#allocation8]  }
  0x22   : > { %2845 = sst [smem:[#allocation35_spill]] %s2044_s19  ;;  %p2212_p3 = pnand %p1310_p0, %p296_p2 }
  0x23   : > { %s308_s26 = sshll.u32 %s2058_s25, 4  ;;  %s2059_s28 = smov [#allocation11]   ;;  %s309_s26 = int_to_ptr.vmem [resolvable:$true] %s308_s26 }
  0x24   : > { %s2846_s24 = scalar_select %p2212_p3, 1, 0 }
  0x25   : > { %p1419_p4 = pneg %p2212_p3  ;;  %s334_s29 = sshll.u32 %s2059_s28, 4  ;;  %s2224_s29 = int_to_ptr.vmem [resolvable:$true] %s334_s29 }
  0x26   : > { %2847 = sst [smem:[#allocation36_spill]] %s2846_s24 }
  0x27   : > { %p2220_p5 = pnand %p1419_p4, %p2808_p1  ;;  %s2849_s1 = sld [smem:[#allocation40_spill]] }
  0x29   : > { %s2848_s27 = scalar_select %p2220_p5, 1, 0 }
  0x2a   : > { %p2234_p7 = pneg %p2220_p5 }
  0x2d   : > { %s1626_s19 = scalar_lea.hbm %s2849_s1, 256 }
  0x2e   : > { %p1627_p6 = scmp.ne.s32.totalorder %s2849_s1, %s1626_s19  ;;  %p1633_p10 = scmp.lt.u32.totalorder %s1626_s19, %s2849_s1 }
  0x30   : > { %p1629_p8 = pnand %p2234_p7, %p1627_p6 }
  0x32   : > { %p1630_p9 = pneg %p1629_p8 }
  0x34   : > { %p1635_p11 = pnand %p1633_p10, %p1630_p9 }
  0x36   : > { %1638 = shalt.err (!%p1635_p11)
}
  0x37   : > { %s1639_s8 = scalar_lea.vmem %s309_s26, 256  ;;  %p1647_p2 = scmp.lt.s32.totalorder %s309_s26, %s309_s26 }
  0x38   : > { %p1640_p12 = scmp.ne.s32.totalorder %s309_s26, %s1639_s8  ;;  %p1648_p4 = scmp.lt.s32.totalorder %s1639_s8, %s1639_s8 }
  0x3a   : > { %p1642_p13 = pnand %p1640_p12, %p2234_p7  ;;  %p1649_p1 = por %p1648_p4, %p1647_p2 }
  0x3c   : > { %p1643_p0 = pneg %p1642_p13 }
  0x3e   : > { %p1650_p3 = pnand %p1649_p1, %p1643_p0 }
  0x40   : > { %1653 = shalt.err (!%p1650_p3)
}
  0x41   : > { %s2060_s7 = smov 64   ;;  %s2061_s9 = smov 4  }
  0x42   : > { %1422 = dma.hbm_to_vmem [thread:$0]  (!%p2220_p5), %s2849_s1, 256, %s309_s26, [#allocation9], %s2060_s7, %s2060_s7, %s2061_s9  }
  0x43   : > { %s2851_s3 = sld [smem:[#allocation42_spill]] }
  0x49   : > { %s1654_s6 = scalar_lea.hbm %s2851_s3, 128 }
  0x4a   : > { %p1655_p6 = scmp.ne.s32.totalorder %s2851_s3, %s1654_s6  ;;  %p1661_p8 = scmp.lt.u32.totalorder %s1654_s6, %s2851_s3 }
  0x4c   : > { %p1657_p1 = pnand %p1655_p6, %p2234_p7 }
  0x4e   : > { %p1658_p3 = pneg %p1657_p1 }
  0x50   : > { %p1663_p9 = pnand %p1661_p8, %p1658_p3 }
  0x52   : > { %1666 = shalt.err (!%p1663_p9)
}
  0x53   : > { %s1667_s26 = scalar_lea.vmem %s2224_s29, 128  ;;  %p1675_p13 = scmp.lt.s32.totalorder %s2224_s29, %s2224_s29 }
  0x54   : > { %p1668_p10 = scmp.ne.s32.totalorder %s2224_s29, %s1667_s26  ;;  %p1676_p0 = scmp.lt.s32.totalorder %s1667_s26, %s1667_s26 }
  0x56   : > { %p1670_p11 = pnand %p1668_p10, %p2234_p7  ;;  %p1677_p2 = por %p1676_p0, %p1675_p13 }
  0x58   : > { %p1671_p12 = pneg %p1670_p11 }
  0x5a   : > { %p1678_p4 = pnand %p1677_p2, %p1671_p12 }
  0x5c   : > { %1681 = shalt.err (!%p1678_p4)
}
  0x5d   : > { %1428 = dma.hbm_to_vmem [thread:$0]  (!%p2220_p5), %s2851_s3, 128, %s2224_s29, [#allocation12], %s2060_s7, %s2060_s7, %s2061_s9  }
  0x5e   : > { %s2819_s10 = sadd.s32 1, %s2048_s20  ;;  %p2814_p6 = scmp.eq.s32.totalorder %s2056_s22, 0 }
  0x5f   : > { %p2277_p1 = scmp.ge.s32.totalorder %s2819_s10, 2  ;;  %p175_p3 = scmp.ne.s32.totalorder %s2024_s14, %s2020_s13 }
  0x60   : > { %p181_p8 = scmp.ne.s32.totalorder %s2020_s13, %s2016_s12  ;;  %p2853_p10 = scmp.eq.s32.totalorder %s2207_s23, 0 }
  0x61   : > { %s2852_s11 = scalar_select %p2277_p1, 1, 0 }
  0x62   : > { %p177_p9 = por %p175_p3, %p2814_p6  ;;  %p2290_p11 = por %p181_p8, %p2853_p10 }
  0x63   : > { %p2813_p12 = scmp.lt.s32.totalorder %s2056_s22, 4  ;;  %s381_s29 = sand.u32 1, %s2056_s22  }
  0x64   : > { %s2854_s19 = scalar_select %p2290_p11, 1, 0 }
  0x65   : > { %s383_s7 = sand.u32 1, %s2024_s14   ;;  %s1320_s24 = sshll.u32 %s2048_s20, 7 }
  0x66   : > { %2855 = sst [smem:[#allocation37_spill]] %s2854_s19  ;;  %s1319_s9 = sshll.u32 %s383_s7, 4 }
  0x67   : > { %s2856_s5 = sld [smem:[#allocation44_spill]]  ;;  %s385_s12 = scalar_lea.vmem [#allocation14], %s1319_s9 }
  0x68   : > { %s391_s6 = sshll.u32 %s385_s12, 4  ;;  %p2305_p13 = pnand %p2813_p12, %p177_p9  ;;  %s2309_s6 = int_to_ptr.vmem [resolvable:$true] %s391_s6 }
  0x69   : > { %s2311_s7 = scalar_lea.sflag [#allocation15], %s381_s29 }
  0x6a   : > { %p1684_p2 = pneg %p2305_p13 }
  0x6d   : > { %s2301_s26 = scalar_lea.hbm %s2856_s5, %s1320_s24  ;;  %s1687_s8 = scalar_lea.hbm %s2856_s5, 512 }
  0x6e   : > { %s1682_s28 = scalar_lea.hbm %s2301_s26, 256  ;;  %p1688_p8 = scmp.lt.u32.totalorder %s2301_s26, %s2856_s5 }
  0x6f   : > { %p1683_p0 = scmp.ne.s32.totalorder %s2301_s26, %s1682_s28  ;;  %p1689_p9 = scmp.lt.u32.totalorder %s1687_s8, %s1682_s28 }
  0x70   : > { %p1691_p12 = scmp.lt.u32.totalorder %s1682_s28, %s2301_s26 }
  0x71   : > { %p1685_p4 = pnand %p1684_p2, %p1683_p0  ;;  %p1690_p10 = por %p1689_p9, %p1688_p8 }
  0x73   : > { %p1686_p3 = pneg %p1685_p4  ;;  %p1692_p6 = por %p1691_p12, %p1690_p10 }
  0x75   : > { %p1693_p11 = pnand %p1692_p6, %p1686_p3 }
  0x77   : > { %1696 = shalt.err (!%p1693_p11)
}
  0x78   : > { %s1697_s29 = scalar_lea.vmem %s2309_s6, 256  ;;  %s2062_s9 = smov [#allocation14]  }
  0x79   : > { %p1698_p0 = scmp.ne.s32.totalorder %s2309_s6, %s1697_s29  ;;  %s1702_s24 = sshll.u32 %s2062_s9, 4  ;;  %s1703_s24 = int_to_ptr.vmem [resolvable:$false] %s1702_s24 }
  0x7a   : > { %s1704_s18 = scalar_lea.vmem %s1703_s24, 512  ;;  %p1705_p5 = scmp.lt.s32.totalorder %s2309_s6, %s1703_s24 }
  0x7b   : > { %p1700_p4 = pnand %p1698_p0, %p1684_p2  ;;  %p1706_p8 = scmp.lt.s32.totalorder %s1704_s18, %s1697_s29 }
  0x7d   : > { %p1701_p1 = pneg %p1700_p4  ;;  %p1707_p9 = por %p1706_p8, %p1705_p5 }
  0x7f   : > { %p1708_p12 = pnand %p1707_p9, %p1701_p1 }
  0x81   : > { %1711 = shalt.err (!%p1708_p12)
}
  0x82   : > { %s2063_s28 = smov 256   ;;  %s2064_s8 = smov 128  }
  0x83   : > { %s2065_s12 = smov 8   ;;  %s2066_s9 = smov [#allocation10]  }
  0x84   : > { %1438 = dma.hbm_to_vmem [thread:$0]  (!%p2305_p13), %s2301_s26, 256, %s2309_s6, %s2311_s7, %s2063_s28, %s2064_s8, %s2065_s12  }
  0x85   : > { %s321_s10 = sshll.u32 %s2066_s9, 4  ;;  %s2067_s24 = smov [#allocation13]   ;;  %s322_s10 = int_to_ptr.vmem [resolvable:$true] %s321_s10 }
  0x86   : > { %s347_s29 = sshll.u32 %s2067_s24, 4  ;;  %s2858_s2 = sld [smem:[#allocation41_spill]]  ;;  %s348_s29 = int_to_ptr.vmem [resolvable:$true] %s347_s29 }
  0x8c   : > { %s1712_s3 = scalar_lea.hbm %s2858_s2, 512 }
  0x8d   : > { %p1713_p5 = scmp.ne.s32.totalorder %s2858_s2, %s1712_s3  ;;  %p1719_p11 = scmp.lt.u32.totalorder %s1712_s3, %s2858_s2 }
  0x8f   : > { %p1715_p6 = pnand %p1713_p5, %p2234_p7 }
  0x91   : > { %p1716_p1 = pneg %p1715_p6 }
  0x93   : > { %p1721_p13 = pnand %p1719_p11, %p1716_p1 }
  0x95   : > { %1724 = shalt.err (!%p1721_p13)
}
  0x96   : > { %s1725_s26 = scalar_lea.vmem %s322_s10, 512  ;;  %p1733_p0 = scmp.lt.s32.totalorder %s322_s10, %s322_s10 }
  0x97   : > { %p1726_p2 = scmp.ne.s32.totalorder %s322_s10, %s1725_s26  ;;  %p1734_p4 = scmp.lt.s32.totalorder %s1725_s26, %s1725_s26 }
  0x99   : > { %p1728_p3 = pnand %p1726_p2, %p2234_p7  ;;  %p1735_p8 = por %p1734_p4, %p1733_p0 }
  0x9b   : > { %p1729_p10 = pneg %p1728_p3 }
  0x9d   : > { %p1736_p9 = pnand %p1735_p8, %p1729_p10 }
  0x9f   : > { %1739 = shalt.err (!%p1736_p9)
}
  0xa0   : > { %p2859_p12 = scmp.ne.s32.totalorder %s2848_s27, 0  ;;  %s2860_s4 = sld [smem:[#allocation43_spill]] }
  0xa2   : > { %1425 = dma.hbm_to_vmem [thread:$0]  (!%p2859_p12), %s2858_s2, 512, %s322_s10, [#allocation9], %s2064_s8, %s2064_s8, %s2065_s12  }
  0xa6   : > { %s1740_s19 = scalar_lea.hbm %s2860_s4, 256 }
  0xa7   : > { %p1741_p5 = scmp.ne.s32.totalorder %s2860_s4, %s1740_s19  ;;  %p1747_p11 = scmp.lt.u32.totalorder %s1740_s19, %s2860_s4 }
  0xa9   : > { %p1743_p6 = pnand %p1741_p5, %p2234_p7 }
  0xab   : > { %p1744_p1 = pneg %p1743_p6 }
  0xad   : > { %p1749_p13 = pnand %p1747_p11, %p1744_p1 }
  0xaf   : > { %1752 = shalt.err (!%p1749_p13)
}
  0xb0   : > { %s1753_s18 = scalar_lea.vmem %s348_s29, 256  ;;  %p1761_p0 = scmp.lt.s32.totalorder %s348_s29, %s348_s29 }
  0xb1   : > { %p1754_p2 = scmp.ne.s32.totalorder %s348_s29, %s1753_s18  ;;  %p1762_p4 = scmp.lt.s32.totalorder %s1753_s18, %s1753_s18 }
  0xb3   : > { %p1756_p3 = pnand %p1754_p2, %p2234_p7  ;;  %p1763_p8 = por %p1762_p4, %p1761_p0 }
  0xb5   : > { %p1757_p10 = pneg %p1756_p3 }
  0xb7   : > { %p1764_p9 = pnand %p1763_p8, %p1757_p10 }
  0xb9   : > { %1767 = shalt.err (!%p1764_p9)
}
  0xba   : > { %1431 = dma.hbm_to_vmem [thread:$0]  (!%p2859_p12), %s2860_s4, 256, %s348_s29, [#allocation12], %s2064_s8, %s2064_s8, %s2065_s12  }
  0xbb   : > { %s49_s27 = sadd.s32 1, %s2052_s21  ;;  %s2861_s25 = sadd.s32 1, %s2048_s20 }
  0xbc   : > { %p2862_p7 = scmp.ne.s32.totalorder %s2852_s11, 0  ;;  %s58_s1 = sadd.s32 1, %s2036_s17 }
  0xbd   : > { %p65_p6 = scmp.ne.s32.totalorder %s2036_s17, %s2032_s16  ;;  %p71_p1 = scmp.ne.s32.totalorder %s2032_s16, %s2028_s15 }
  0xbe   : > { %s2925_s25 = smov (%p2862_p7, %s2861_s25), 0  ;;  %s2927_s27 = smov (!%p2862_p7, %s49_s27), %s2052_s21 }
  0xbf   : > { %s54_s26 = ssub.s32 %s2048_s20, %s2925_s25  ;;  %p51_p5 = scmp.ge.s32.totalorder %s2927_s27, 2 }
  0xc0   : > { %p166_p11 = scmp.eq.s32.totalorder %s54_s26, 0  ;;  %p2864_p12 = scmp.eq.s32.totalorder %s2056_s22, 0 }
  0xc1   : > { %s2929_s27 = smov (%p51_p5, %s2927_s27), 0  ;;  %p2866_p2 = scmp.eq.s32.totalorder %s2207_s23, 0 }
  0xc2   : > { %2863 = sst [smem:[#allocation38_spill]] %s2929_s27  ;;  %p2404_p13 = por %p2864_p12, %p65_p6 }
  0xc3   : > { %p2410_p3 = por %p2866_p2, %p71_p1  ;;  %s2416_s12 = ssub.s32 %s2052_s21, %s2929_s27 }
  0xc4   : > { %s361_s15 = sand.u32 1, %s2036_s17   ;;  %s55_s29 = sor.u32 %s54_s26, %s2416_s12 }
  0xc5   : > { %s2867_s11 = scalar_select %p2410_p3, 1, 0 }
  0xc6   : > { %p56_p0 = scmp.eq.s32.totalorder %s55_s29, 0  ;;  %s2868_s3 = sadd.s32 1, %s2024_s14 }
  0xc7   : > { %s2424_s5 = scalar_select %p166_p11, %s2024_s14, %s2868_s3  }
  0xc8   : > { %s2427_s13 = scalar_select %p56_p0, %s2036_s17, %s58_s1  }
  0xc9   : > { %s1316_s19 = sshll.u32 %s361_s15, 1  ;;  %s1317_s6 = sshll.u32 %s2052_s21, 1 }
  0xca   : > { %s370_s28 = sadd.s32 %s2048_s20, %s1317_s6  ;;  %s365_s24 = scalar_lea.vmem [#allocation5], %s1316_s19 }
  0xcb   : > { %s1318_s9 = sshll.u32 %s370_s28, 5  ;;  %s374_s18 = sshll.u32 %s365_s24, 4  ;;  %s2436_s18 = int_to_ptr.vmem [resolvable:$true] %s374_s18 }
  0xcc   : > { %s2869_s0 = sld [smem:[#allocation39_spill]]  ;;  %p2870_p4 = scmp.lt.s32.totalorder %s2056_s22, 4 }
  0xcd   : > { %s362_s1 = scalar_lea.sflag [#allocation6], %s361_s15 }
  0xce   : > { %p2442_p8 = pnand %p2870_p4, %p2404_p13 }
  0xd0   : > { %p1770_p7 = pneg %p2442_p8 }
  0xd2   : > { %s2434_s2 = scalar_lea.hbm %s2869_s0, %s1318_s9  ;;  %s1773_s8 = scalar_lea.hbm %s2869_s0, 128 }
  0xd3   : > { %s1768_s29 = scalar_lea.hbm %s2434_s2, 32  ;;  %p1774_p1 = scmp.lt.u32.totalorder %s2434_s2, %s2869_s0 }
  0xd4   : > { %p1769_p9 = scmp.ne.s32.totalorder %s2434_s2, %s1768_s29  ;;  %p1775_p11 = scmp.lt.u32.totalorder %s1773_s8, %s1768_s29 }
  0xd5   : > { %p1777_p13 = scmp.lt.u32.totalorder %s1768_s29, %s2434_s2 }
  0xd6   : > { %p1771_p5 = pnand %p1770_p7, %p1769_p9  ;;  %p1776_p12 = por %p1775_p11, %p1774_p1 }
  0xd8   : > { %p1772_p6 = pneg %p1771_p5  ;;  %p1778_p2 = por %p1777_p13, %p1776_p12 }
  0xda   : > { %p1779_p0 = pnand %p1778_p2, %p1772_p6 }
  0xdc   : > { %1782 = shalt.err (!%p1779_p0)
}
  0xdd   : > { %s1783_s15 = scalar_lea.vmem %s2436_s18, 32  ;;  %s2068_s9 = smov [#allocation5]  }
  0xde   : > { %p1784_p4 = scmp.ne.s32.totalorder %s2436_s18, %s1783_s15  ;;  %s1788_s24 = sshll.u32 %s2068_s9, 4  ;;  %s1789_s24 = int_to_ptr.vmem [resolvable:$false] %s1788_s24 }
  0xdf   : > { %s1790_s10 = scalar_lea.vmem %s1789_s24, 64  ;;  %p1791_p10 = scmp.lt.s32.totalorder %s2436_s18, %s1789_s24 }
  0xe0   : > { %p1786_p9 = pnand %p1784_p4, %p1770_p7  ;;  %p1792_p1 = scmp.lt.s32.totalorder %s1790_s10, %s1783_s15 }
  0xe2   : > { %p1787_p5 = pneg %p1786_p9  ;;  %p1793_p11 = por %p1792_p1, %p1791_p10 }
  0xe4   : > { %p1794_p12 = pnand %p1793_p11, %p1787_p5 }
  0xe6   : > { %1797 = shalt.err (!%p1794_p12)
}
  0xe7   : > { %s2872_s30 = sld [smem:[#allocation32_spill]]  ;;  %s2873_s29 = sld [smem:[#allocation31_spill]] }
  0xe8   : > { %s2874_s3 = sld [smem:[#allocation30_spill]]  ;;  %s1309_s26 = sadd.s32 4294967294, %s2056_s22  }
  0xe9   : > { %1435 = dma.hbm_to_vmem [thread:$0]  (!%p2442_p8), %s2434_s2, 32, %s2436_s18, %s362_s1  }
  0xea   : > { %p2875_p10 = scmp.eq.s32.totalorder %s2416_s12, 0  ;;  %p257_p13 = scmp.eq.s32.totalorder %s2207_s23, 3 }
  0xeb   : > { %p263_p2 = scmp.eq.s32.totalorder %s1309_s26, 3  ;;  %p2876_p0 = scmp.eq.s32.totalorder %s2056_s22, 0 }
  0xec   : > { %p2877_p9 = scmp.eq.s32.totalorder %s2207_s23, 0  ;;  %s2824_s18 = sshll.u32 %s2052_s21, 7 }
  0xed   : > { %s194_s19 = sadd.s32 1, %s2872_s30  ;;  %p201_p7 = scmp.ne.s32.totalorder %s2872_s30, %s2873_s29 }
  0xee   : > { %s2476_s8 = scalar_select %p2875_p10, %s2872_s30, %s194_s19  }
  0xef   : > { %p207_p6 = scmp.ne.s32.totalorder %s2873_s29, %s2874_s3  ;;  %p203_p4 = por %p201_p7, %p2876_p0 }
  0xf0   : > { %p2491_p1 = por %p257_p13, %p201_p7  ;;  %s2823_s12 = sand.u32 1, %s2872_s30  }
  0xf1   : > { %p2487_p5 = por %p207_p6, %p2877_p9  ;;  %p2495_p8 = por %p263_p2, %p207_p6 }
  0xf2   : > { %s2879_s28 = scalar_select %p2491_p1, 1, 0 }
  0xf3   : > { %s2878_s6 = scalar_select %p2487_p5, 1, 0 }
  0xf4   : > { %s2880_s2 = scalar_select %p2495_p8, 1, 0 }
  0xf5   : > { %s2503_s1 = sshll.u32 %s2823_s12, 3  ;;  %s2881_s24 = sld [smem:[#allocation45_spill]] }
  0xf6   : > { %p2882_p11 = scmp.lt.s32.totalorder %s2056_s22, 4  ;;  %s405_s3 = scalar_lea.vmem [#allocation16], %s2503_s1 }
  0xf7   : > { %s412_s26 = sshll.u32 %s405_s3, 4  ;;  %s413_s26 = int_to_ptr.vmem [resolvable:$true] %s412_s26 }
  0xf8   : > { %p2514_p12 = pnand %p2882_p11, %p203_p4 }
  0xfa   : > { %p1800_p7 = pneg %p2514_p12 }
  0xfb   : > { %s2510_s10 = scalar_lea.hbm %s2881_s24, %s2824_s18  ;;  %s1803_s12 = scalar_lea.hbm %s2881_s24, 256 }
  0xfc   : > { %s1798_s19 = scalar_lea.hbm %s2510_s10, 128  ;;  %p1804_p2 = scmp.lt.u32.totalorder %s2510_s10, %s2881_s24 }
  0xfd   : > { %p1799_p10 = scmp.ne.s32.totalorder %s2510_s10, %s1798_s19  ;;  %p1805_p0 = scmp.lt.u32.totalorder %s1803_s12, %s1798_s19 }
  0xfe   : > { %p1807_p9 = scmp.lt.u32.totalorder %s1798_s19, %s2510_s10 }
  0xff   : > { %p1801_p6 = pnand %p1800_p7, %p1799_p10  ;;  %p1806_p4 = por %p1805_p0, %p1804_p2 }
 0x101   : > { %p1802_p13 = pneg %p1801_p6  ;;  %p1808_p11 = por %p1807_p9, %p1806_p4 }
 0x103   : > { %p1809_p8 = pnand %p1808_p11, %p1802_p13 }
 0x105   : > { %1812 = shalt.err (!%p1809_p8)
}
 0x106   : > { %s1813_s3 = scalar_lea.vmem %s413_s26, 128  ;;  %s2069_s4 = smov [#allocation16]  }
 0x107   : > { %p1814_p1 = scmp.ne.s32.totalorder %s413_s26, %s1813_s3  ;;  %s1818_s15 = sshll.u32 %s2069_s4, 4  ;;  %s1819_s15 = int_to_ptr.vmem [resolvable:$false] %s1818_s15 }
 0x108   : > { %s1820_s9 = scalar_lea.vmem %s1819_s15, 256  ;;  %p1821_p5 = scmp.lt.s32.totalorder %s413_s26, %s1819_s15 }
 0x109   : > { %p1816_p10 = pnand %p1814_p1, %p1800_p7  ;;  %p1822_p3 = scmp.lt.s32.totalorder %s1820_s9, %s1813_s3 }
 0x10b   : > { %p1817_p6 = pneg %p1816_p10  ;;  %p1823_p0 = por %p1822_p3, %p1821_p5 }
 0x10d   : > { %p1824_p2 = pnand %p1823_p0, %p1817_p6 }
 0x10f   : > { %1827 = shalt.err (!%p1824_p2)
}
 0x110   : > { %1441 = dma.hbm_to_vmem [thread:$0]  (!%p2514_p12), %s2510_s10, 128, %s413_s26, %s2311_s7  }
 0x111   : > { %s2884_s0 = sshll.u32 %s2052_s21, 7  ;;  %s2885_s4 = sld [smem:[#allocation46_spill]] }
 0x112   : > { %s423_s3 = scalar_lea.vmem [#allocation17], %s2503_s1  ;;  %s2886_s9 = sand.u32 1, %s2872_s30  }
 0x113   : > { %s430_s15 = sshll.u32 %s423_s3, 4  ;;  %s420_s24 = scalar_lea.sflag [#allocation18], %s2886_s9  ;;  %s431_s15 = int_to_ptr.vmem [resolvable:$true] %s430_s15 }
 0x117   : > { %s2546_s19 = scalar_lea.hbm %s2885_s4, %s2884_s0  ;;  %s1833_s26 = scalar_lea.hbm %s2885_s4, 256 }
 0x118   : > { %s1828_s27 = scalar_lea.hbm %s2546_s19, 128  ;;  %p1834_p8 = scmp.lt.u32.totalorder %s2546_s19, %s2885_s4 }
 0x119   : > { %p1829_p3 = scmp.ne.s32.totalorder %s2546_s19, %s1828_s27  ;;  %p1835_p13 = scmp.lt.u32.totalorder %s1833_s26, %s1828_s27 }
 0x11a   : > { %p1837_p9 = scmp.lt.u32.totalorder %s1828_s27, %s2546_s19 }
 0x11b   : > { %p1831_p5 = pnand %p1829_p3, %p1800_p7  ;;  %p1836_p4 = por %p1835_p13, %p1834_p8 }
 0x11d   : > { %p1832_p1 = pneg %p1831_p5  ;;  %p1838_p11 = por %p1837_p9, %p1836_p4 }
 0x11f   : > { %p1839_p10 = pnand %p1838_p11, %p1832_p1 }
 0x121   : > { %1842 = shalt.err (!%p1839_p10)
}
 0x122   : > { %s1843_s30 = scalar_lea.vmem %s431_s15, 128  ;;  %s2070_s1 = smov [#allocation17]  }
 0x123   : > { %p1844_p6 = scmp.ne.s32.totalorder %s431_s15, %s1843_s30  ;;  %s1848_s18 = sshll.u32 %s2070_s1, 4  ;;  %s1849_s18 = int_to_ptr.vmem [resolvable:$false] %s1848_s18 }
 0x124   : > { %s1850_s3 = scalar_lea.vmem %s1849_s18, 256  ;;  %p1851_p3 = scmp.lt.s32.totalorder %s431_s15, %s1849_s18 }
 0x125   : > { %p1846_p0 = pnand %p1844_p6, %p1800_p7  ;;  %p1852_p5 = scmp.lt.s32.totalorder %s1850_s3, %s1843_s30 }
 0x127   : > { %p1847_p2 = pneg %p1846_p0  ;;  %p1853_p8 = por %p1852_p5, %p1851_p3 }
 0x129   : > { %p1854_p13 = pnand %p1853_p8, %p1847_p2 }
 0x12b   : > { %1857 = shalt.err (!%p1854_p13)
}
 0x12c   : > { %1444 = dma.hbm_to_vmem [thread:$0]  (!%p2514_p12), %s2546_s19, 128, %s431_s15, %s420_s24  }
 0x12d   : > { %s2887_s27 = sld [smem:[#allocation36_spill]] }
 0x133   : > { %p2888_p1 = scmp.ne.s32.totalorder %s2887_s27, 0 }
 0x134   : > { %s441_s9 = sand.u32 (!%p2888_p1), 1, %s2032_s16   ;;  %p2889_p7 = scmp.ne.s32.totalorder (!%p2888_p1), %s2867_s11, 0 }
 0x135   : > { %439 = sbr.rel (%p2888_p1) target bundleno = 1295 (0x50f), region = 52  ;;  %s2573_s7 = sshll.u32 (!%p2888_p1), %s441_s9, 1 }
 0x136   : > { %s442_s10 = scalar_lea.sflag (!%p2888_p1), [#allocation6], %s441_s9  ;;  %s445_s26 = scalar_lea.vmem (!%p2888_p1), [#allocation5], %s2573_s7 }
 0x13c   : > { %1971 = dma.done.wait (%p2889_p7), %s442_s10, 32  }
 0x13d   : > { %1973 = vsyncadd (%p2889_p7), %s442_s10, 4294967264  ;;  %p2890_p4 = scmp.eq.s32.totalorder %s2207_s23, 0 }
 0x13f   : > { %1975 = dma.done.wait (%p2890_p4), [#allocation9], 768   ;;  %p2891_p12 = pmov %p2890_p4 }
 0x140   : > { %p2892_p9 = pmov %p2890_p4 }
 0x141   : > { %1977 = vsyncadd (%p2891_p12), [#allocation9], 4294966528 }
 0x142   : > { %1979 = dma.done.wait (%p2892_p9), [#allocation12], 384   ;;  %p2893_p11 = pmov %p2890_p4 }
 0x143   : > { %s2894_s24 = sld [smem:[#allocation33_spill]]  ;;  %s2895_s29 = sld [smem:[#allocation37_spill]] }
 0x144   : > { %1981 = vsyncadd (%p2893_p11), [#allocation12], 4294966912  ;;  %s466_s19 = sand.u32 1, %s2207_s23  }
 0x145   : > { %s467_s11 = scalar_lea.sflag [#allocation15], %s466_s19 }
 0x149   : > { %s468_s15 = sand.u32 1, %s2894_s24   ;;  %p2896_p10 = scmp.ne.s32.totalorder %s2895_s29, 0 }
 0x14a   : > { %s2590_s0 = sshll.u32 %s468_s15, 4 }
 0x14b   : > { %s470_s12 = scalar_lea.vmem [#allocation14], %s2590_s0 }
 0x14c   : > { %1983 = dma.done.wait (%p2896_p10), %s467_s11, 256  }
 0x14d   : > { %1985 = vsyncadd (%p2896_p10), %s467_s11, 4294967040  ;;  %s2897_s30 = sld [smem:[#allocation31_spill]]  ;;  %p2898_p6 = scmp.ne.s32.totalorder %s2878_s6, 0 }
 0x153   : > { %s2598_s1 = sand.u32 1, %s2897_s30  }
 0x154   : > { %s1332_s18 = sshll.u32 %s2598_s1, 3 }
 0x155   : > { %s479_s3 = scalar_lea.vmem [#allocation16], %s1332_s18 }
 0x156   : > { %1987 = dma.done.wait (%p2898_p6), %s467_s11, 128  }
 0x157   : > { %1989 = vsyncadd (%p2898_p6), %s467_s11, 4294967168  ;;  %s485_s23 = scalar_lea.sflag [#allocation18], %s2598_s1  ;;  %s2606_s27 = scalar_lea.vmem [#allocation17], %s1332_s18 }
 0x158   : > { %1991 = dma.done.wait (%p2898_p6), %s485_s23, 128  }
 0x159   : > { %1993 = vsyncadd (%p2898_p6), %s485_s23, 4294967168  ;;  %s534_s9 = scalar_lea.vmem [#allocation19], %s2598_s1  ;;  %s540_s10 = scalar_lea.vmem [#allocation20], %s2598_s1 }
 0x15a   : > { %s2899_s24 = sld [smem:[#allocation34_spill]] }
 0x160   : > { %p1334_p0 = scmp.ne.s32.totalorder %s2899_s24, 0 }
 0x161   : > { %vm546_vm0 = vcmask (!%p1334_p0), 0   ;;  %v2071_v0 = vmov (!%p1334_p0), 0.0  }
 0x162   : > { %545 = sbr.rel (%p1334_p0) target bundleno = 361 (0x169), region = 88  ;;  %547 = vst.msk [vmem:[#allocation2] sm:$0x1] (!%p1334_p0), %vm546_vm0, %v2071_v0  ;;  %548 = vst.msk [vmem:[#allocation3] sm:$0x1] (!%p1334_p0), %vm546_vm0, %v2071_v0 }
 0x163   : > { %549 = vst.msk [vmem:[#allocation4] sm:$0x1] (!%p1334_p0), %vm546_vm0, %v2071_v0 }
 0x169 PF: > { %v729_v1 = vld [vmem:[%s479_s3] sm:$0xff]  ;;  %v550_v2 = vld [vmem:[%s445_s26] sm:$0x3]  ;;  %vm596_vm1 = vcmask 1041408   ;;  %s2072_s6 = smov 2   ;;  %v1605_v4 = vld [vmem:[#allocation8] sm:$0xff]   ;;  %v741_v27 = vlaneseq }
 0x16a   : > { %732 = vrot.lane.b32.xlu0 %v729_v1, %s2072_s6  ;;  %1383 = vmatprep.subr.msk.bf16.mxu0 %vm596_vm1, %v550_v2  ;;  %v598_v3 = vsel %vm596_vm1, %v550_v2, 0  ;;  %vm589_vm2 = vcmask 31744   ;;  %v1606_v5 = vld [vmem:[#allocation8 + $0x8] sm:$0xff]   ;;  %v2073_v6 = vmov 2   ;;  %v2074_v7 = vmov 3   ;;  %s2077_s7 = smov 127  }
 0x16b   : > { %1365 = vmatpush3.bf16.msra.mxu0 %v598_v3  ;;  %1366 = vmatprep.mubr.msk.bf16.mxu0 %vm589_vm2, %v1605_v4  ;;  %v2075_v8 = vmov 0   ;;  %v2076_v9 = vmov 1   ;;  %vm730_vm3 = vcmp.ne.f32.partialorder %v729_v1, -1.0  ;;  %v2078_v13 = vmov 4   ;;  %v557_v14 = vld [vmem:[#allocation10 + $0x10] sm:$0xff]  ;;  %v555_v18 = vld [vmem:[#allocation10] sm:$0xff] }
 0x16c   : > { %1596 = vset.pattern.permute.xlu1 %v2073_v6  ;;  %1598 = vset.pattern.permute.xlu0 %v2074_v7  ;;  %v796_v12 = vsel %vm730_vm3, 1, %v2075_v8  ;;  %v658_v15 = vld [vmem:[#allocation13 + $0x8] sm:$0xf]  ;;  %v556_v20 = vld [vmem:[#allocation10 + $0x8] sm:$0xff]  ;;  %v558_v24 = vld [vmem:[#allocation10 + $0x18] sm:$0xff]  ;;  %v2079_v26 = vmov 0.0  }
 0x16d   : > { %746 = vperm.xlu1 %1596, %v729_v1   ;;  %v657_v25 = vld [vmem:[#allocation13] sm:$0xff]  ;;  %1370 = vmatprep.subr.bf16.mxu1 %v2079_v26  ;;  %vm2080_vm4 = vmmov 0   ;;  %v2621_v29 = vshrl.u32 %v741_v27, 7  ;;  %vm674_vm6 = vcmask 261120   ;;  %vm901_vm7 = vcmask 1040384   ;;  %s2900_s15 = sld [smem:[#allocation34_spill]] }
 0x16e   : > { %1367 = vmatmul.mubr.msk.bf16.vlgmr.msra.gmra.mrb[0].mxu0 %vm589_vm2, %v1606_v5  ;;  %1378 = vmatprep.subr.mxu0 %v2079_v26  ;;  %v2629_v35 = vld [vmem:[%s470_s12] sm:$0xff]  ;;  %vm823_vm10 = vcmask 64512   ;;  %vm1041_vm12 = vcmask 0  }
 0x16f   : > { %1374 = vmatprep.mubr.msk.bf16.mxu1 %vm2080_vm4, %v2079_v26  ;;  %1380 = vmatprep.mubr.msk.f32.mxu0 %vm2080_vm4, %v2079_v26  ;;  %v743_v31 = vsub.s32 3, %v2621_v29  ;;  %v752_v32 = vsub.s32 1, %v2621_v29  ;;  %v763_v33 = vsub.s32 2, %v2621_v29  ;;  %v772_v34 = vsub.s32 0, %v2621_v29 }
 0x170   : > { %v784_v48 = vsub.s32 4, %v2621_v29 }
 0x171   : > { %1597 = vset.pattern.permute.xlu1 %v2075_v8  ;;  %v744_v36 = vrot.slane %v2629_v35, %v743_v31  ;;  %v753_v37 = vrot.slane %v2629_v35, %v752_v32  ;;  %v764_v38 = vrot.slane %v2629_v35, %v763_v33  ;;  %v773_v39 = vrot.slane %v2629_v35, %v772_v34 }
 0x172   : > { %755 = vperm.xlu1 %1597, %v729_v1   ;;  %v785_v51 = vrot.slane %v2629_v35, %v784_v48  ;;  %v2081_v31 = vmov 1.0  }
 0x173   : > { %p1351_p2 = scmp.ne.s32.totalorder %s2900_s15, 1 }
 0x176   : > { %1599 = vset.pattern.permute.xlu1 %v2076_v9 }
 0x177   : > { %775 = vperm.xlu1 %1599, %v729_v1  }
 0x17b   : > { %1600 = vset.pattern.permute.xlu1 %v2073_v6 }
 0x1dc   : > { %v733_v10 = vpop.permute.xlu0 %732 }
 0x1dd   : > { %v735_v11 = vsub.f32 %v729_v1, %v733_v10  ;;  %v1607_v10 = vld [vmem:[#allocation11] sm:$0x3f]  }
 0x1df   : > { %737 = vrot.lane.b32.xlu0 %v735_v11, %s2077_s7 }
 0x1e3   : > { %766 = vperm.xlu0 %1598, %v729_v1  }
 0x1e7   : > { %1601 = vset.pattern.permute.xlu0 %v2078_v13 }
 0x1e8   : > { %798 = vperm.xlu0 %1601, %v796_v12  }
 0x1ec   : > { %1603 = vset.pattern.permute.xlu0 %v2075_v8  ;;  %v747_v28 = vpop.permute.xlu1 %746 }
 0x1ed   : > { %571 = vperm.xlu0 %1603, %v557_v14   ;;  %v749_v42 = vmin.f32 %v744_v36, %v747_v28 }
 0x1f1   : > { %666 = vperm.xlu0 %1603, %v658_v15   ;;  %v756_v30 = vpop.permute.xlu1 %755 }
 0x1f2   : > { %v758_v43 = vmax.f32 %v753_v37, %v756_v30  ;;  %v822_v30 = vld [vmem:[%s2606_s27] sm:$0x1f] }
 0x1f4   : > { %v759_v46 = vsub.f32 %v749_v42, %v758_v43 }
 0x1f5   : > { %1604 = vset.pattern.permute.xlu0 %v2078_v13 }
 0x1f6   : > { %v776_v41 = vpop.permute.xlu1 %775  ;;  %v760_v49 = vmax.f32 %v759_v46, 0.0 }
 0x1f7   : > { %v778_v45 = vmax.f32 %v773_v39, %v776_v41 }
 0x241   : > { %v1368_v19 = vpop.f32.mrb[0].mxu0 }
 0x242   : > { %v634_v21 = vpop.f32.mrb[1].mxu0 }
 0x243   : > { %v1369_v22 = vpop.f32.mrb[2].mxu0 }
 0x244   : > { %v637_v23 = vpop.f32.mrb[3].mxu0 }
 0x251   : > { %v738_v16 = vpop.permute.xlu0 %737 }
 0x252   : > { %v740_v17 = vmul.f32 %v738_v16, %v735_v11 }
 0x254   : > { %788 = vperm.xlu1 %1600, %v740_v17   ;;  %v2641_v17 = vcvt.s32.f32 %v2621_v29 }
 0x258   : > { %1602 = vset.pattern.permute.xlu1 %v2075_v8 }
 0x259   : > { %561 = vperm.xlu1 %1602, %v555_v18  }
 0x25d   : > { %566 = vperm.xlu1 %1602, %v556_v20  }
 0x261   : > { %576 = vperm.xlu1 %1602, %v558_v24  }
 0x262   : > { %v767_v40 = vpop.permute.xlu0 %766 }
 0x263   : > { %v769_v44 = vmin.f32 %v764_v38, %v767_v40 }
 0x265   : > { %661 = vperm.xlu1 %1602, %v657_v25   ;;  %v779_v47 = vsub.f32 %v769_v44, %v778_v45 }
 0x267   : > { %v780_v50 = vmax.f32 %v779_v47, 0.0  ;;  %v799_v55 = vpop.permute.xlu0 %798  ;;  %v1047_v47 = vld [vmem:[#allocation4] sm:$0x1] }
 0x268   : > { %vm800_vm5 = vcmp.eq.s32.totalorder %v799_v55, 1 }
 0x269   : > { %v781_v53 = vmul.f32 %v780_v50, %v760_v49 }
 0x26c   : > { %v572_v60 = vpop.permute.xlu0 %571 }
 0x26d   : > { %v643_v0 = vadd.f32 %v1368_v19, %v572_v60 }
 0x26f   : > { %v651_v3 = vmax.f32 %v643_v0, 0.0 }
 0x2d3   : > { %v789_v52 = vpop.permute.xlu1 %788 }
 0x2d4   : > { %v791_v54 = vadd.f32 %v789_v52, %v785_v51 }
 0x2d6   : > { %v792_v56 = vsub.f32 %v791_v54, %v781_v53 }
 0x2d8   : > { %v793_v57 = vmax.f32 %v792_v56, 1e-08  ;;  %v562_v58 = vpop.permute.xlu1 %561 }
 0x2d9   : > { %v635_v59 = vadd.f32 %v634_v21, %v562_v58 }
 0x2da   : > { %1608 = vrcp.f32 %v793_v57 }
 0x2db   : > { %v649_v62 = vmax.f32 %v635_v59, 0.0  ;;  %v961_v59 = vrot.slane %v2629_v35, 5 }
 0x2dc   : > { %v567_v61 = vpop.permute.xlu1 %566 }
 0x2dd   : > { %v638_v63 = vadd.f32 %v637_v23, %v567_v61 }
 0x2df   : > { %v650_v1 = vmax.f32 %v638_v63, 0.0 }
 0x2e0   : > { %v577_v2 = vpop.permute.xlu1 %576 }
 0x2e1   : > { %v646_v4 = vadd.f32 %v1369_v22, %v577_v2  ;;  %v655_v5 = vpack.c.bf16 %v650_v1, %v649_v62 }
 0x2e3   : > { %v652_v6 = vmax.f32 %v646_v4, 0.0  ;;  %1371 = vmatpush3.bf16.msra.mxu1 %v655_v5  ;;  %v2082_v5 = vmov -1.0  }
 0x2e4   : > { %v1609_v7 = vpop.eup %1608  ;;  %1372 = vmatprep.subr.bf16.mxu1 %v2079_v26  ;;  %v662_v32 = vpop.permute.xlu1 %661 }
 0x2e5   : > { %v795_v8 = vmul.f32 %v1609_v7, %v781_v53  ;;  %v656_v9 = vpack.c.bf16 %v652_v6, %v651_v3  ;;  %v728_v53 = vld [vmem:[%s470_s12 + $0x8] sm:$0x1]  ;;  %v964_v3 = vrot.slane %v2629_v35, 7  ;;  %v667_v7 = vpop.permute.xlu0 %666  ;;  %v2083_v35 = vmov 0.75  }
 0x2e6   : > { %v974_v63 = vrot.slane %v728_v53, 5 }
 0x2e7   : > { %v801_v11 = vsel %vm800_vm5, %v795_v8, -1.0  ;;  %1373 = vmatpush3.bf16.msra.mxu1 %v656_v9 }
 0x2e8   : > { %v802_v12 = vrot.slane %v801_v11, 4 }
 0x2ea   : > { %v803_v13 = vmax.f32 %v801_v11, %v802_v12  ;;  %1375 = vmatmul.mubr.msk.bf16.vlgmr.msra.gmra.mrb[0].mxu1 %vm674_vm6, %v1607_v10 }
 0x2ec   : > { %v804_v14 = vrot.slane %v803_v13, 2 }
 0x2ee   : > { %v805_v15 = vmax.f32 %v803_v13, %v804_v14  ;;  %v968_v13 = vrot.slane %v728_v53, 7 }
 0x2f0   : > { %v806_v16 = vrot.slane %v805_v15, 1 }
 0x2f2   : > { %v2643_v18 = vmax.f32 %v805_v15, %v806_v16 }
 0x2f4   : > { %vm811_vm8 = vcmp.ge.f32.partialorder %v801_v11, %v2643_v18  ;;  %vm897_vm9 = vcmp.ge.f32.partialorder %v2643_v18, 0.5  ;;  %vm898_vm13 = vcmp.lt.f32.partialorder %v2643_v18, 0.4 }
 0x2f5   : > { %v812_v19 = vsel %vm811_vm8, %v2641_v17, 8.0  ;;  %v2651_v20 = vsel %vm897_vm9, 1.0, %v2079_v26  ;;  %v920_v6 = vsel %vm898_vm13, 0.0, %v2082_v5 }
 0x2f6   : > { %v813_v21 = vrot.slane %v812_v19, 4  ;;  %v902_v22 = vsel %vm901_vm7, %v2651_v20, 0.0 }
 0x2f7   : > { %903 = vadd.xlane.f32.xlu1 %v902_v22 }
 0x2f8   : > { %v814_v23 = vmin.f32 %v812_v19, %v813_v21 }
 0x2fa   : > { %v815_v24 = vrot.slane %v814_v23, 2 }
 0x2fc   : > { %v816_v25 = vmin.f32 %v814_v23, %v815_v24 }
 0x2fe   : > { %v817_v27 = vrot.slane %v816_v25, 1 }
 0x300   : > { %v818_v28 = vmin.f32 %v816_v25, %v817_v27 }
 0x302   : > { %vm819_vm11 = vcmp.eq.f32.partialorder %v2641_v17, %v818_v28 }
 0x303   : > { %1379 = vmatpush3.msk.msra.mxu0 %vm819_vm11, %v2081_v31 }
 0x304   : > { %1381 = vmatmul.mubr.msk.f32.vlgmr.msra.gmra.mrb[4].mxu0 %vm823_vm10, %v822_v30 }
 0x384   : > { %v904_v33 = vpop.xlane.xlu1 %903 }
 0x385   : > { %v905_v34 = vrot.slane %v904_v33, 4 }
 0x387   : > { %v906_v36 = vadd.f32 %v905_v34, %v904_v33 }
 0x389   : > { %v907_v37 = vrot.slane %v906_v36, 2 }
 0x38b   : > { %v908_v38 = vadd.f32 %v907_v37, %v906_v36 }
 0x38d   : > { %v909_v39 = vrot.slane %v908_v38, 1 }
 0x38f   : > { %v910_v40 = vadd.f32 %v909_v39, %v908_v38 }
 0x391   : > { %1384 = vpush %v910_v40 }
 0x3bd   : > { %v712_v41 = vpop.f32.mrb[0].mxu1 }
 0x3be   : > { %v713_v42 = vadd.f32 %v712_v41, %v662_v32  ;;  %v1376_v43 = vpop.f32.mrb[1].mxu1 }
 0x3bf   : > { %v715_v44 = vpop.f32.mrb[2].mxu1 }
 0x3c0   : > { %v1341_v45 = vmul.f32 -1.442695, %v713_v42  ;;  %v1377_v46 = vpop.f32.mrb[3].mxu1 }
 0x3c2   : > { %1610 = vpow2.f32 %v1341_v45  ;;  %s1385_s26 = spop %1384 }
 0x3c3   : > { %v1048_v49 = vstv %s1385_s26 }
 0x3c4   : > { %v1049_v50 = vadd.f32 %v1048_v49, %v1047_v47 }
 0x3c6   : > { %1050 = vst.msk [vmem:[#allocation4] sm:$0x1] %vm1041_vm12, %v1049_v50 }
 0x3cc   : > { %v1611_v51 = vpop.eup %1610 }
 0x3cd   : > { %v722_v52 = vadd.f32 1.0, %v1611_v51 }
 0x3cf   : > { %1612 = vrcp.f32 %v722_v52 }
 0x3d7   : > { %v893_v54 = vpop.f32.mrb[4].mxu0 }
 0x3d8   : > { %v1386_v55 = vround.rtne.f32 %v893_v54  ;;  %v951_v56 = vrot.slane %v893_v54, 6  ;;  %v1382_v57 = vpop.f32.mrb[5].mxu0 }
 0x3d9   : > { %v1613_v58 = vpop.eup %1612 }
 0x3da   : > { %v725_v60 = vmax.f32 %v1613_v58, 0.0001  ;;  %v916_v61 = vrot.slane %v1386_v55, %v784_v48  ;;  %v953_v62 = vsub.f32 %v893_v54, %v951_v56  ;;  %v716_v48 = vadd.f32 %v715_v44, %v667_v7 }
 0x3dc   : > { %v726_v0 = vmin.f32 %v725_v60, 0.9999  ;;  %v954_v1 = vmul.f32 0.5, %v953_v62  ;;  %v959_v2 = vmax.f32 %v953_v62, 1.0  ;;  %vm917_vm14 = vcmp.eq.f32.partialorder %v2641_v17, %v916_v61 }
 0x3dd   : > { %v1346_v4 = vsel %vm917_vm14, 1.0, %v2079_v26  ;;  %v980_v17 = vrot.slane %v716_v48, 7  ;;  %v989_v19 = vrot.slane %v716_v48, 1 }
 0x3de   : > { %v956_v8 = vrot.slane %v954_v1, 2  ;;  %v971_v9 = vmul.f32 %v961_v59, %v959_v2  ;;  %v976_v10 = vmul.f32 %v974_v63, %v959_v2  ;;  %v2669_v29 = vsel %vm897_vm9, %v1346_v4, %v920_v6 }
 0x3df   : > { %vm923_vm15 = vcmp.eq.f32.partialorder %v2669_v29, 1.0  ;;  %v925_v11 = vsub.f32 1.0, %v726_v0  ;;  %1614 = vlog2.f32 %v726_v0  ;;  %v932_v40 = vsub.f32 1.0, %v2669_v29 }
 0x3e0   : > { %v958_v12 = vadd.f32 %v956_v8, %v893_v54  ;;  %1616 = vlog2.f32 %v971_v9  ;;  %v924_v26 = vsel %vm923_vm15, 0.25, %v2083_v35  ;;  %vm938_vm4 = vcmp.ne.f32.partialorder %v2669_v29, -1.0 }
 0x3e1   : > { %1618 = vlog2.f32 %v976_v10  ;;  %v926_v14 = vsel %vm923_vm15, %v925_v11, %v726_v0 }
 0x3e2   : > { %v963_v15 = vsub.f32 %v958_v12, %v961_v59  ;;  %v927_v16 = vmul.f32 %v926_v14, %v924_v26  ;;  %1620 = vlog2.f32 %v925_v11 }
 0x3e4   : > { %v966_v18 = vmul.f32 %v964_v3, %v963_v15  ;;  %v970_v21 = vmul.f32 %v968_v13, %v963_v15  ;;  %v928_v22 = vmul.f32 %v927_v16, %v926_v14 }
 0x3e6   : > { %v982_v23 = vsub.f32 %v970_v21, %v980_v17  ;;  %v991_v24 = vsub.f32 %v966_v18, %v989_v19 }
 0x3e8   : > { %v983_v25 = vand.u32 2147483647, %v982_v23  ;;  %v992_v27 = vand.u32 2147483647, %v991_v24  ;;  %v1043_v24 = vld [vmem:[#allocation3] sm:$0x1] }
 0x3e9   : > { %v1615_v28 = vpop.eup %1614 }
 0x3ea   : > { %v1617_v30 = vpop.eup %1616  ;;  %v930_v31 = vmul.f32 0.6931472, %v1615_v28  ;;  %v985_v32 = vmul.f32 4.5, %v983_v25  ;;  %v994_v33 = vmul.f32 4.5, %v992_v27  ;;  %v1348_v45 = vadd.f32 -0.055555556, %v992_v27 }
 0x3eb   : > { %v1619_v34 = vpop.eup %1618  ;;  %v973_v36 = vmul.f32 0.6931472, %v1617_v30  ;;  %vm993_vm0 = vcmp.le.f32.partialorder %v992_v27, 0.11111111  ;;  %v1347_v50 = vadd.f32 -0.055555556, %v983_v25 }
 0x3ec   : > { %v1621_v37 = vpop.eup %1620  ;;  %v978_v38 = vmul.f32 0.6931472, %v1619_v34  ;;  %v931_v39 = vmul.f32 %v930_v31, %v2669_v29  ;;  %v995_v41 = vmul.f32 %v994_v33, %v992_v27  ;;  %v986_v44 = vmul.f32 %v985_v32, %v983_v25  ;;  %v1055_v28 = vld [vmem:[#allocation4] sm:$0x1] (!%p1351_p2) }
 0x3ed   : > { %v1013_v42 = vsub.f32 %v973_v36, %v989_v19  ;;  %v934_v43 = vmul.f32 0.6931472, %v1621_v37  ;;  %vm984_vm1 = vcmp.le.f32.partialorder %v983_v25, 0.11111111  ;;  %v1057_v30 = vmax.f32 (!%p1351_p2), %v1055_v28, 1.0 }
 0x3ee   : > { %v1002_v46 = vsub.f32 %v978_v38, %v980_v17  ;;  %v997_v51 = vsel %vm993_vm0, %v995_v41, %v1348_v45  ;;  %v988_v55 = vsel %vm984_vm1, %v986_v44, %v1347_v50  ;;  %v1061_v31 = vmul.f32 (!%p1351_p2), 4.0, %v1055_v28 }
 0x3ef   : > { %v1014_v47 = vand.u32 2147483647, %v1013_v42  ;;  %v935_v49 = vmul.f32 %v934_v43, %v932_v40  ;;  %v999_v53 = vrot.slane %v997_v51, 7  ;;  %1622 = vrcp.f32 (!%p1351_p2), %v1057_v30 }
 0x3f0   : > { %v1003_v52 = vand.u32 2147483647, %v1002_v46  ;;  %v1062_v32 = vmax.f32 (!%p1351_p2), %v1061_v31, 1.0 }
 0x3f1   : > { %v936_v54 = vadd.f32 %v935_v49, %v931_v39  ;;  %v1016_v56 = vmul.f32 4.5, %v1014_v47  ;;  %v1001_v57 = vadd.f32 %v999_v53, %v988_v55  ;;  %v1350_v63 = vadd.f32 -0.055555556, %v1014_v47 }
 0x3f2   : > { %v1005_v58 = vmul.f32 4.5, %v1003_v52  ;;  %v1349_v62 = vadd.f32 -0.055555556, %v1003_v52  ;;  %vm1004_vm2 = vcmp.le.f32.partialorder %v1003_v52, 0.11111111  ;;  %1624 = vrcp.f32 (!%p1351_p2), %v1062_v32 }
 0x3f3   : > { %v937_v59 = vsub.f32 0.0, %v936_v54  ;;  %v1017_v60 = vmul.f32 %v1016_v56, %v1014_v47  ;;  %vm1015_vm3 = vcmp.le.f32.partialorder %v1014_v47, 0.11111111 }
 0x3f4   : > { %v1006_v61 = vmul.f32 %v1005_v58, %v1003_v52 }
 0x3f5   : > { %v939_v0 = vmul.f32 %v937_v59, %v928_v22  ;;  %v1019_v2 = vsel %vm1015_vm3, %v1017_v60, %v1350_v63 }
 0x3f6   : > { %v1008_v1 = vsel %vm1004_vm2, %v1006_v61, %v1349_v62  ;;  %v1021_v6 = vrot.slane %v1019_v2, 1 }
 0x3f7   : > { %v940_v3 = vsel %vm938_vm4, %v939_v0, 0.0  ;;  %v1010_v4 = vrot.slane %v1008_v1, 2 }
 0x3f8   : > { %941 = vadd.xlane.f32.xlu0 %v940_v3 }
 0x3f9   : > { %v1012_v5 = vadd.f32 %v1010_v4, %v1001_v57  ;;  %v1623_v34 = vpop.eup (!%p1351_p2), %1622 }
 0x3fb   : > { %v1023_v7 = vadd.f32 %v1021_v6, %v1012_v5 }
 0x3fc   : > { %v1625_v38 = vpop.eup (!%p1351_p2), %1624 }
 0x3fd   : > { %v1024_v8 = vmul.f32 %v2651_v20, %v1023_v7  ;;  %v1038_v20 = vld [vmem:[#allocation2] sm:$0x1] }
 0x3ff   : > { %v1026_v9 = vrot.slane %v1024_v8, 1 }
 0x401   : > { %v1028_v10 = vsel %vm901_vm7, %v1026_v9, 0.0 }
 0x402   : > { %1029 = vadd.xlane.f32.xlu0 %v1028_v10 }
 0x485   : > { %v942_v48 = vpop.xlane.xlu0 %941 }
 0x486   : > { %v943_v11 = vrot.slane %v942_v48, 4 }
 0x488   : > { %v944_v12 = vadd.f32 %v943_v11, %v942_v48 }
 0x48a   : > { %v945_v13 = vrot.slane %v944_v12, 2 }
 0x48c   : > { %v946_v35 = vadd.f32 %v945_v13, %v944_v12 }
 0x48e   : > { %v947_v29 = vrot.slane %v946_v35, 1 }
 0x48f   : > { %v1030_v26 = vpop.xlane.xlu0 %1029 }
 0x490   : > { %v1031_v14 = vrot.slane %v1030_v26, 4  ;;  %v948_v15 = vadd.f32 %v947_v29, %v946_v35 }
 0x492   : > { %v1032_v16 = vadd.f32 %v1031_v14, %v1030_v26  ;;  %1387 = vpush %v948_v15 }
 0x494   : > { %v1033_v17 = vrot.slane %v1032_v16, 2 }
 0x496   : > { %v1034_v19 = vadd.f32 %v1033_v17, %v1032_v16 }
 0x498   : > { %v1035_v18 = vrot.slane %v1034_v19, 1 }
 0x49a   : > { %v1036_v21 = vadd.f32 %v1035_v18, %v1034_v19 }
 0x49c   : > { %1389 = vpush %v1036_v21 }
 0x4c3   : > { %s1388_s29 = spop %1387 }
 0x4c4   : > { %v1039_v22 = vstv %s1388_s29 }
 0x4c5   : > { %v1040_v23 = vadd.f32 %v1039_v22, %v1038_v20 }
 0x4c7   : > { %1042 = vst.msk [vmem:[#allocation2] sm:$0x1] %vm1041_vm12, %v1040_v23 }
 0x4cb   : > { %1054 = sbr.rel (%p1351_p2) target bundleno = 1244 (0x4dc), region = 92 }
 0x4cd   : > { %s1390_s19 = spop %1389 }
 0x4ce   : > { %v1044_v25 = vstv %s1390_s19  ;;  %v1056_v33 = vld [vmem:[#allocation2] sm:$0x1] (!%p1351_p2) }
 0x4cf   : > { %v1045_v27 = vadd.f32 %v1044_v25, %v1043_v24  ;;  %v1059_v37 = vmul.f32 (!%p1351_p2), %v1623_v34, %v1056_v33 }
 0x4d1   : > { %1046 = vst.msk [vmem:[#allocation3] sm:$0x1] %vm1041_vm12, %v1045_v27  ;;  %1065 = vst.msk [vmem:[%s534_s9] sm:$0x1] (!%p1351_p2), %vm1041_vm12, %v1059_v37 }
 0x4d8   : > { %v1060_v36 = vld [vmem:[#allocation3] sm:$0x1] }
 0x4d9   : > { %v1064_v39 = vmul.f32 %v1625_v38, %v1060_v36 }
 0x4db   : > { %1066 = vst.msk [vmem:[%s540_s10] sm:$0x1] %vm1041_vm12, %v1064_v39 }
 0x4dc PF: > { %s2901_s0 = sld [smem:[#allocation35_spill]]  ;;  %s1084_s27 = sshll.u32 %s534_s9, 4  ;;  %s1085_s27 = int_to_ptr.vmem [resolvable:$true] %s1084_s27 }
 0x4dd   : > { %s2902_s18 = sld [smem:[#allocation47_spill]]  ;;  %s1068_s24 = scalar_lea.sflag [#allocation7], %s2598_s1 }
 0x4de   : > { %s1858_s6 = scalar_lea.vmem %s1085_s27, 16  ;;  %p2904_p5 = scmp.ne.s32.totalorder %s2879_s28, 0 }
 0x4df   : > { %p1859_p3 = scmp.ne.s32.totalorder %s1085_s27, %s1858_s6  ;;  %s2084_s7 = smov [#allocation19]  }
 0x4e0   : > { %s1862_s26 = sshll.u32 %s2084_s7, 4  ;;  %s1863_s26 = int_to_ptr.vmem [resolvable:$false] %s1862_s26 }
 0x4e1   : > { %p1860_p8 = pnand %p1859_p3, %p2904_p5  ;;  %s1864_s29 = scalar_lea.vmem %s1863_s26, 32 }
 0x4e2   : > { %s1352_s11 = sshll.u32 %s2901_s0, 4  ;;  %p1865_p1 = scmp.lt.s32.totalorder %s1085_s27, %s1863_s26 }
 0x4e3   : > { %s2903_s3 = smov %s2902_s18  ;;  %s2692_s23 = scalar_lea.hbm %s2902_s18, %s1352_s11 }
 0x4e4   : > { %p1861_p13 = pneg %p1860_p8  ;;  %p1866_p7 = scmp.lt.s32.totalorder %s1864_s29, %s1858_s6 }
 0x4e6   : > { %p1867_p4 = por %p1866_p7, %p1865_p1 }
 0x4e8   : > { %p1868_p12 = pnand %p1867_p4, %p1861_p13 }
 0x4ea   : > { %1871 = shalt.err (!%p1868_p12)
}
 0x4eb   : > { %s1872_s9 = scalar_lea.hbm %s2692_s23, 16  ;;  %s1876_s12 = scalar_lea.hbm %s2903_s3, 32 }
 0x4ec   : > { %p1873_p9 = scmp.ne.s32.totalorder %s2692_s23, %s1872_s9  ;;  %p1877_p6 = scmp.lt.u32.totalorder %s2692_s23, %s2903_s3 }
 0x4ed   : > { %p1878_p0 = scmp.lt.u32.totalorder %s1876_s12, %s1872_s9  ;;  %p1880_p3 = scmp.lt.u32.totalorder %s1872_s9, %s2692_s23 }
 0x4ee   : > { %p1874_p11 = pnand %p1873_p9, %p2904_p5 }
 0x4ef   : > { %p1879_p2 = por %p1878_p0, %p1877_p6 }
 0x4f0   : > { %p1875_p10 = pneg %p1874_p11 }
 0x4f1   : > { %p1881_p8 = por %p1880_p3, %p1879_p2 }
 0x4f3   : > { %p1882_p13 = pnand %p1881_p8, %p1875_p10 }
 0x4f5   : > { %1885 = shalt.err (!%p1882_p13)
}
 0x4f6   : > { %1415 = dma.vmem_to_hbm [thread:$0]  (%p2904_p5), %s1085_s27, 16, %s2692_s23, %s1068_s24  }
 0x4f7   : > { %s2905_s26 = sld [smem:[#allocation48_spill]]  ;;  %s1097_s19 = sshll.u32 %s540_s10, 4  ;;  %s1098_s19 = int_to_ptr.vmem [resolvable:$true] %s1097_s19 }
 0x4f8   : > { %s1072_s9 = scalar_lea.sflag [#allocation21], %s2598_s1  ;;  %s1886_s15 = scalar_lea.vmem %s1098_s19, 16 }
 0x4f9   : > { %p1887_p1 = scmp.ne.s32.totalorder %s1098_s19, %s1886_s15  ;;  %s2085_s12 = smov [#allocation20]  }
 0x4fa   : > { %s1890_s30 = sshll.u32 %s2085_s12, 4  ;;  %s1891_s30 = int_to_ptr.vmem [resolvable:$false] %s1890_s30 }
 0x4fb   : > { %p1888_p7 = pnand %p1887_p1, %p2904_p5  ;;  %s1892_s18 = scalar_lea.vmem %s1891_s30, 32 }
 0x4fc   : > { %p1893_p12 = scmp.lt.s32.totalorder %s1098_s19, %s1891_s30  ;;  %p1894_p9 = scmp.lt.s32.totalorder %s1892_s18, %s1886_s15 }
 0x4fd   : > { %s2719_s29 = scalar_lea.hbm %s2905_s26, %s1352_s11  ;;  %p1889_p4 = pneg %p1888_p7 }
 0x4fe   : > { %p1895_p11 = por %p1894_p9, %p1893_p12 }
 0x500   : > { %p1896_p10 = pnand %p1895_p11, %p1889_p4 }
 0x502   : > { %1899 = shalt.err (!%p1896_p10)
}
 0x503   : > { %s1900_s1 = scalar_lea.hbm %s2719_s29, 16  ;;  %s1904_s11 = scalar_lea.hbm %s2905_s26, 32 }
 0x504   : > { %p1901_p6 = scmp.ne.s32.totalorder %s2719_s29, %s1900_s1  ;;  %p1905_p3 = scmp.lt.u32.totalorder %s2719_s29, %s2905_s26 }
 0x505   : > { %p1906_p8 = scmp.lt.u32.totalorder %s1904_s11, %s1900_s1  ;;  %p1908_p1 = scmp.lt.u32.totalorder %s1900_s1, %s2719_s29 }
 0x506   : > { %p1902_p0 = pnand %p1901_p6, %p2904_p5 }
 0x507   : > { %p1907_p13 = por %p1906_p8, %p1905_p3 }
 0x508   : > { %p1903_p2 = pneg %p1902_p0 }
 0x509   : > { %p1909_p7 = por %p1908_p1, %p1907_p13 }
 0x50b   : > { %p1910_p4 = pnand %p1909_p7, %p1903_p2 }
 0x50d   : > { %1913 = shalt.err (!%p1910_p4)
}
 0x50e   : > { %1416 = dma.vmem_to_hbm [thread:$0]  (%p2904_p5), %s1098_s19, 16, %s2719_s29, %s1072_s9  }
 0x50f PF: > { %s2906_s24 = sld [smem:[#allocation30_spill]]  ;;  %p1461_p12 = scmp.ge.s32.totalorder %s2056_s22, 2 }
 0x510   : > { %p2907_p9 = scmp.ne.s32.totalorder %s2880_s2, 0 }
 0x512   : > { %p1446_p11 = pnand %p1461_p12, %p2907_p9 }
 0x515   : > { %s1109_s6 = sand.u32 1, %s2906_s24  }
 0x516   : > { %s1110_s7 = scalar_lea.sflag [#allocation7], %s1109_s6 }
 0x517   : > { %1995 = dma.done.wait (!%p1446_p11), %s1110_s7, 16  }
 0x518   : > { %1997 = vsyncadd (!%p1446_p11), %s1110_s7, 4294967280  ;;  %s1118_s15 = scalar_lea.sflag [#allocation21], %s1109_s6 }
 0x519   : > { %1999 = dma.done.wait (!%p1446_p11), %s1118_s15, 16  }
 0x51a   : > { %2001 = vsyncadd (!%p1446_p11), %s1118_s15, 4294967280  ;;  %s37_s22 = sadd.s32 1, %s2056_s22   ;;  %s2909_s30 = sld [smem:[#allocation31_spill]] }
 0x51b   : > { %p2746_p10 = scmp.ge.s32.totalorder %s37_s22, 6   ;;  %s2910_s10 = sld [smem:[#allocation32_spill]] }
 0x51c   : > { %s2911_s12 = sld [smem:[#allocation33_spill]]  ;;  %s2912_s2 = smov %s2427_s13 }
 0x51d   : > { %s2913_s29 = sld [smem:[#allocation38_spill]]  ;;  %s2914_s11 = smov %s2476_s8 }
 0x51e   : > { %s2915_s13 = smov %s2024_s14  ;;  %s2916_s14 = smov %s2424_s5 }
 0x51f   : > { %s2917_s15 = smov %s2032_s16  ;;  %s2918_s16 = smov %s2036_s17 }
 0x520   : > { %s2919_s17 = smov %s2912_s2  ;;  %s2920_s18 = smov %s2048_s20 }
 0x521   : > { %s2921_s19 = smov %s2052_s21  ;;  %s2922_s20 = smov %s2925_s25 }
 0x522   :  { %36 = sbr.rel (!%p2746_p10) target bundleno = 29 (0x1d), region = 175 }
 0x523   : > { %s2923_s21 = smov %s2913_s29 }
 0x529   :  { %1122 = vsyncpa [#allocation6], 1 }
 0x52a   :  { %1124 = vsyncpa [#allocation6 + $0x1], 1 }
 0x52b   :  { %1125 = vsyncpa [#allocation9], 1 }
 0x52c   :  { %1126 = vsyncpa [#allocation12], 1 }
 0x52d   :  { %1127 = vsyncpa [#allocation15], 1 }
 0x52e   :  { %1129 = vsyncpa [#allocation15 + $0x1], 1 }
 0x52f   :  { %1130 = vsyncpa [#allocation18], 1 }
 0x530   :  { %1132 = vsyncpa [#allocation18 + $0x1], 1 }
 0x531   :  { %1133 = vsyncpa [#allocation7], 1 }
 0x532   :  { %1135 = vsyncpa [#allocation7 + $0x1], 1 }
 0x533   :  { %1136 = vsyncpa [#allocation21], 1 }
 0x534   :  { %1138 = vsyncpa [#allocation21 + $0x1], 1 }

</bundles_post_ra>
